<compile_context>
chip_gen: v5e
topology: v5e:2x2
jax: 0.10.0
libtpu: 0.0.40
codegen_flags: <defaults>
</compile_context>

<pallas_src>
import functools

import jax
import jax.numpy as jnp
import numpy as np
from jax.experimental import pallas as pl
from jax.experimental.pallas import tpu as pltpu

# fixed architecture constants (from the nn.Module)
H0 = W0 = 16            # input spatial size
C0, C1, C2 = 3, 16, 32  # channels: input, conv1, conv2
H1 = W1 = 8             # after first 2x2 max-pool
H2 = W2 = 4             # after second 2x2 max-pool (== adaptive-pool target)
FC1_OUT = 64
KIN1 = W0 * C0          # 48  lanes per conv1 dh-band
KIN2 = W1 * C1          # 128 lanes per conv2 dh-band
FEAT = C2 * H2 * W2     # 512
MAX_TB = 32             # images per grid step (batch tile), multiple of 8


# ----------------------------------------------------------------------------
# Fused kernel
# ----------------------------------------------------------------------------
def _fused_forward_kernel(x_ref, w1_ref, b1_ref, w2_ref, b2_ref,
                          wfc1_ref, bfc1_ref, wfc2_ref, bfc2_ref,
                          out_ref,
                          tap1_ref, c1_ref, tap2_ref, c2_ref, feat_ref,
                          *, tb):
    f32 = jnp.float32
    r1 = H0 * tb                       # conv1 rows: r = h*tb + n
    r2 = H1 * tb                       # conv2 rows: r = g*tb + n

    # ---------------- conv1 (3x3, pad=1) + ReLU : ONE matmul ----------------
    # dh = t-1 is folded into the row offset of lane-band t; dw, zero W-padding
    # and the even/odd-w output split are folded into the banded weight w1_ref.
    zeros1 = jnp.zeros((2 * tb, 3 * KIN1), f32)
    tap1_ref[0:2 * tb, :] = zeros1                 # top halo (h = -1 reads)
    tap1_ref[r1:r1 + 2 * tb, :] = zeros1           # bottom halo (h = 16 reads)
    tap1_ref[2 * tb:2 * tb + r1, 0:KIN1] = x_ref[...]            # dh = -1
    tap1_ref[tb:tb + r1, KIN1:2 * KIN1] = x_ref[...]             # dh =  0
    tap1_ref[0:r1, 2 * KIN1:3 * KIN1] = x_ref[...]               # dh = +1
    c1_ref[...] = jnp.maximum(
        jnp.dot(tap1_ref[tb:tb + r1, :], w1_ref[...],
                preferred_element_type=f32) + b1_ref[...], 0.0)

    # -------- maxpool1 (2x2) fused into conv2 tap-band construction ---------
    # even/odd w sit in the two 128-lane halves of c1, so the W-half of the
    # pool is max(lo_half, hi_half); the H-half pairs contiguous row blocks.
    zeros2 = jnp.zeros((2 * tb, 3 * KIN2), f32)
    tap2_ref[0:2 * tb, :] = zeros2
    tap2_ref[r2:r2 + 2 * tb, :] = zeros2
    for g in range(H1):                # fixed trip count (8), batch independent
        ra = (2 * g) * tb
        rb = (2 * g + 1) * tb
        blk = jnp.maximum(
            jnp.maximum(c1_ref[ra:ra + tb, 0:128], c1_ref[ra:ra + tb, 128:256]),
            jnp.maximum(c1_ref[rb:rb + tb, 0:128], c1_ref[rb:rb + tb, 128:256]))
        tap2_ref[2 * tb + g * tb:2 * tb + (g + 1) * tb, 0:KIN2] = blk         # dh = -1
        tap2_ref[tb + g * tb:tb + (g + 1) * tb, KIN2:2 * KIN2] = blk          # dh =  0
        tap2_ref[g * tb:(g + 1) * tb, 2 * KIN2:3 * KIN2] = blk                # dh = +1

    # ---------------- conv2 (3x3, pad=1) + ReLU : ONE matmul ----------------
    c2_ref[...] = jnp.maximum(
        jnp.dot(tap2_ref[tb:tb + r2, :], w2_ref[...],
                preferred_element_type=f32) + b2_ref[...], 0.0)

    # -------- maxpool2 (2x2) -> (tb, 512) feature slab ----------------------
    # AdaptiveAvgPool2d((4,4)) is the identity here (map is already 4x4).
    # TODO(synk): general AdaptiveAvgPool2d for other input sizes is not
    # implemented inside the fused kernel.
    for h2 in range(H2):               # fixed trip count (4)
        ra = (2 * h2) * tb
        rb = (2 * h2 + 1) * tb
        blk = jnp.maximum(
            jnp.maximum(c2_ref[ra:ra + tb, 0:128], c2_ref[ra:ra + tb, 128:256]),
            jnp.maximum(c2_ref[rb:rb + tb, 0:128], c2_ref[rb:rb + tb, 128:256]))
        feat_ref[:, 128 * h2:128 * (h2 + 1)] = blk

    # -------- fc1 + ReLU (single K=512 matmul), fc2 as lane-reduction -------
    h1v = jnp.maximum(
        jnp.dot(feat_ref[...], wfc1_ref[...], preferred_element_type=f32)
        + bfc1_ref[...], 0.0)
    out = jnp.sum(h1v * wfc2_ref[...], axis=1, keepdims=True) + bfc2_ref[...]
    out_ref[...] = out.astype(out_ref.dtype)


def build_fused_forward(n_pad, tb):
    assert n_pad % tb == 0 and tb % 8 == 0
    grid = (n_pad // tb,)
    r1, r2 = H0 * tb, H1 * tb

    def wspec(shape):
        nd = len(shape)
        return pl.BlockSpec(shape, lambda b: (0,) * nd)

    weight_bytes = 4 * (3 * KIN1 * 256 + 3 * KIN2 * 256 + FEAT * FC1_OUT
                        + 2 * 256 + 2 * FC1_OUT + 2)
    cost = pl.CostEstimate(
        flops=int(n_pad * (2 * H0 * 3 * KIN1 * 256 + 2 * H1 * 3 * KIN2 * 256
                           + 2 * FEAT * FC1_OUT + 2 * FC1_OUT)),
        transcendentals=0,
        bytes_accessed=int(n_pad * (H0 * KIN1 + 1) * 4 + weight_bytes))

    return pl.pallas_call(
        functools.partial(_fused_forward_kernel, tb=tb),
        out_shape=jax.ShapeDtypeStruct((n_pad, 1), jnp.float32),
        grid=grid,
        in_specs=[
            pl.BlockSpec((H0 * tb, KIN1), lambda b: (b, 0)),      # packed input rows
            wspec((3 * KIN1, 256)), wspec((1, 256)),              # conv1 banded W, bias
            wspec((3 * KIN2, 256)), wspec((1, 256)),              # conv2 banded W, bias
            wspec((FEAT, FC1_OUT)), wspec((1, FC1_OUT)),          # fc1 W, bias
            wspec((1, FC1_OUT)), wspec((1, 1)),                   # fc2 row-vector, bias
        ],
        out_specs=pl.BlockSpec((tb, 1), lambda b: (b, 0)),
        scratch_shapes=[
            pltpu.VMEM((r1 + 2 * tb, 3 * KIN1), jnp.float32),     # conv1 taps (+halo)
            pltpu.VMEM((r1, 256), jnp.float32),                   # conv1 output
            pltpu.VMEM((r2 + 2 * tb, 3 * KIN2), jnp.float32),     # conv2 taps (+halo)
            pltpu.VMEM((r2, 256), jnp.float32),                   # conv2 output
            pltpu.VMEM((tb, FEAT), jnp.float32),                  # pooled feature slab
        ],
        compiler_params=pltpu.CompilerParams(
            dimension_semantics=("parallel",),
            vmem_limit_bytes=32 * 1024 * 1024),
        cost_estimate=cost,
    )


# ----------------------------------------------------------------------------
# Parameters (PyTorch layout) + one-time repack into kernel-friendly layouts
# ----------------------------------------------------------------------------
def init_torch_like_params(key):
    ks = jax.random.split(key, 8)

    def uinit(k, shape, fan_in):
        bound = 1.0 / np.sqrt(fan_in)
        return jax.random.uniform(k, shape, jnp.float32, -bound, bound)

    return {
        "conv1_w": uinit(ks[0], (C1, C0, 3, 3), C0 * 9),
        "conv1_b": uinit(ks[1], (C1,), C0 * 9),
        "conv2_w": uinit(ks[2], (C2, C1, 3, 3), C1 * 9),
        "conv2_b": uinit(ks[3], (C2,), C1 * 9),
        "fc1_w": uinit(ks[4], (FC1_OUT, FEAT), FEAT),
        "fc1_b": uinit(ks[5], (FC1_OUT,), FEAT),
        "fc2_w": uinit(ks[6], (1, FC1_OUT), FC1_OUT),
        "fc2_b": uinit(ks[7], (1,), FC1_OUT),
    }


def _pack_conv_banded(w_oihw, width, cin, cout):
    """(cout,cin,3,3) -> (3*width*cin, width*cout) banded weight.

    Row index = t*width*cin + w_in*cin + ci  (t = kh, dh = t-1).
    Col index = even/odd-w_out split:  (w_out%2)*half + (w_out//2)*cout + co,
    so the following 2x2 W-pool is simply max(lanes[:half], lanes[half:]).
    Zero W-padding falls out of the band structure automatically.
    """
    w = np.asarray(w_oihw, np.float32)
    K = width * cin
    half = (width // 2) * cout
    band = np.zeros((3 * K, 2 * half), np.float32)
    for t in range(3):
        for w_out in range(width):
            col = (w_out % 2) * half + (w_out // 2) * cout
            for dw in (-1, 0, 1):
                w_in = w_out + dw
                if 0 <= w_in < width:
                    band[t * K + w_in * cin: t * K + (w_in + 1) * cin,
                         col: col + cout] = w[:, :, t, dw + 1].T
    return jnp.asarray(band)


def _pack_conv_bias(b, width, cout):
    b = np.asarray(b, np.float32)
    half = (width // 2) * cout
    vec = np.zeros((1, 2 * half), np.float32)
    for w_out in range(width):
        col = (w_out % 2) * half + (w_out // 2) * cout
        vec[0, col: col + cout] = b
    return jnp.asarray(vec)


def pack_params(p):
    """One-time repack of PyTorch-layout weights for the fused kernel."""
    w1band = _pack_conv_banded(p["conv1_w"], W0, C0, C1)       # (144, 256)
    b1vec = _pack_conv_bias(p["conv1_b"], W0, C1)              # (1, 256)
    w2band = _pack_conv_banded(p["conv2_w"], W1, C1, C2)       # (384, 256)
    b2vec = _pack_conv_bias(p["conv2_b"], W1, C2)              # (1, 256)
    # PyTorch flatten index k = c*16 + h2*4 + w2  ->  feat lane = h2*128 + w2*32 + c
    fc1 = np.asarray(p["fc1_w"], np.float32).reshape(FC1_OUT, C2, H2, W2)
    wfc1 = jnp.asarray(np.transpose(fc1, (2, 3, 1, 0)).reshape(FEAT, FC1_OUT))
    bfc1 = jnp.asarray(np.asarray(p["fc1_b"], np.float32).reshape(1, FC1_OUT))
    wfc2 = jnp.asarray(np.asarray(p["fc2_w"], np.float32).reshape(1, FC1_OUT))
    bfc2 = jnp.asarray(np.asarray(p["fc2_b"], np.float32).reshape(1, 1))
    return (w1band, b1vec, w2band, b2vec, wfc1, bfc1, wfc2, bfc2)


# ----------------------------------------------------------------------------
# Wrapper: batch tiling + lane-dense repack of the activations
# ----------------------------------------------------------------------------
@jax.jit
def apple_presence_classifier_forward(x_nchw, packed):
    n, c, h, w = x_nchw.shape
    assert (c, h, w) == (C0, H0, W0), "fused kernel is specialized to 3x16x16 inputs"
    tb = MAX_TB if n >= MAX_TB else ((n + 7) // 8) * 8
    n_pad = ((n + tb - 1) // tb) * tb
    x = x_nchw.astype(jnp.float32)
    if n_pad != n:
        x = jnp.pad(x, ((0, n_pad - n), (0, 0), (0, 0), (0, 0)))
    # NCHW -> rows ordered (batch-tile, h, image-in-tile), lanes = (w, c).
    # h-major rows mean all images of a tile share h per row-group, so conv
    # zero-padding in H needs only zeroed halo rows (no per-image masks).
    xr = jnp.transpose(x, (0, 2, 3, 1)).reshape(n_pad // tb, tb, H0, W0 * C0)
    xr = jnp.transpose(xr, (0, 2, 1, 3)).reshape(n_pad * H0, W0 * C0)
    out = build_fused_forward(n_pad, tb)(xr, *packed)
    return out[:n]


# ----------------------------------------------------------------------------
# Pure-JAX reference (same math as the PyTorch module) for a sanity check
# ----------------------------------------------------------------------------
def reference_forward(x_nchw, p):
    dn = ("NCHW", "OIHW", "NCHW")
    prec = jax.lax.Precision.HIGHEST
    y = jax.lax.conv_general_dilated(x_nchw, p["conv1_w"], (1, 1), ((1, 1), (1, 1)),
                                     dimension_numbers=dn, precision=prec)
    y = jax.nn.relu(y + p["conv1_b"][None, :, None, None])
    y = jax.lax.reduce_window(y, -jnp.inf, jax.lax.max, (1, 1, 2, 2),
                              (1, 1, 2, 2), "VALID")
    y = jax.lax.conv_general_dilated(y, p["conv2_w"], (1, 1), ((1, 1), (1, 1)),
                                     dimension_numbers=dn, precision=prec)
    y = jax.nn.relu(y + p["conv2_b"][None, :, None, None])
    y = jax.lax.reduce_window(y, -jnp.inf, jax.lax.max, (1, 1, 2, 2),
                              (1, 1, 2, 2), "VALID")
    feat = y.reshape(y.shape[0], -1)     # adaptive-avg-pool(4,4) == identity at 4x4
    h1 = jax.nn.relu(jnp.dot(feat, p["fc1_w"].T, precision=prec) + p["fc1_b"])
    return jnp.dot(h1, p["fc2_w"].T, precision=prec) + p["fc2_b"]


if __name__ == "__main__":
    key = jax.random.PRNGKey(0)
    k_x1, k_x2, k_p = jax.random.split(key, 3)
    torch_params = init_torch_like_params(k_p)
    packed = pack_params(torch_params)

    # small demo batch (single grid step; batch internally padded to 8)
    x = jax.random.normal(k_x1, (2, C0, H0, W0), dtype=jnp.float32)   # NCHW like PyTorch
    out = apple_presence_classifier_forward(x, packed)
    jax.block_until_ready(out)
    assert out.shape == (2, 1), out.shape
    ref = reference_forward(x, torch_params)
    np.testing.assert_allclose(np.asarray(out), np.asarray(ref), rtol=5e-2, atol=5e-2)

    # larger batch exercising the parallel batch grid and the padding path
    x2 = jax.random.normal(k_x2, (70, C0, H0, W0), dtype=jnp.float32)
    out2 = apple_presence_classifier_forward(x2, packed)
    jax.block_until_ready(out2)
    ref2 = reference_forward(x2, torch_params)
    np.testing.assert_allclose(np.asarray(out2), np.asarray(ref2), rtol=5e-2, atol=5e-2)

    print("KERNEL_OK")
</pallas_src>

<mosaic_0001>
module attributes {stable_mosaic.version = 11 : i64} {
  func.func @_fused_forward_kernel(%arg0: i32, %arg1: memref<128x48xf32, #tpu.memory_space<vmem>>, %arg2: memref<144x256xf32, #tpu.memory_space<vmem>>, %arg3: memref<1x256xf32, #tpu.memory_space<vmem>>, %arg4: memref<384x256xf32, #tpu.memory_space<vmem>>, %arg5: memref<1x256xf32, #tpu.memory_space<vmem>>, %arg6: memref<512x64xf32, #tpu.memory_space<vmem>>, %arg7: memref<1x64xf32, #tpu.memory_space<vmem>>, %arg8: memref<1x64xf32, #tpu.memory_space<vmem>>, %arg9: memref<1x1xf32, #tpu.memory_space<vmem>>, %arg10: memref<8x1xf32, #tpu.memory_space<vmem>>, %arg11: memref<144x144xf32, #tpu.memory_space<vmem>>, %arg12: memref<128x256xf32, #tpu.memory_space<vmem>>, %arg13: memref<80x384xf32, #tpu.memory_space<vmem>>, %arg14: memref<64x256xf32, #tpu.memory_space<vmem>>, %arg15: memref<8x512xf32, #tpu.memory_space<vmem>>) attributes {dimension_semantics = [#tpu.dimension_semantics<parallel>], iteration_bounds = array<i64: 1>, scalar_prefetch = 0 : i64, scratch_operands = 5 : i64, tpu.core_type = #tpu.core_type<tc>, window_params = [{transform_indices = @transform_0, window_bounds = array<i64: 128, 48>}, {pipeline_mode = #tpu.pipeline_mode<synchronous>, transform_indices = @transform_1, window_bounds = array<i64: 144, 256>}, {pipeline_mode = #tpu.pipeline_mode<synchronous>, transform_indices = @transform_2, window_bounds = array<i64: 1, 256>}, {pipeline_mode = #tpu.pipeline_mode<synchronous>, transform_indices = @transform_3, window_bounds = array<i64: 384, 256>}, {pipeline_mode = #tpu.pipeline_mode<synchronous>, transform_indices = @transform_4, window_bounds = array<i64: 1, 256>}, {pipeline_mode = #tpu.pipeline_mode<synchronous>, transform_indices = @transform_5, window_bounds = array<i64: 512, 64>}, {pipeline_mode = #tpu.pipeline_mode<synchronous>, transform_indices = @transform_6, window_bounds = array<i64: 1, 64>}, {pipeline_mode = #tpu.pipeline_mode<synchronous>, transform_indices = @transform_7, window_bounds = array<i64: 1, 64>}, {pipeline_mode = #tpu.pipeline_mode<synchronous>, transform_indices = @transform_8, window_bounds = array<i64: 1, 1>}, {transform_indices = @transform_9, window_bounds = array<i64: 8, 1>}]} {
    %cst = arith.constant 0.000000e+00 : f32
    %0 = vector.broadcast %cst : f32 to vector<16x144xf32>
    %c0 = arith.constant 0 : index
    %c0_0 = arith.constant 0 : index
    %1 = vector.load %arg11[%c0, %c0_0] : memref<144x144xf32, #tpu.memory_space<vmem>>, vector<16x144xf32>
    tpu.vector_store %arg11[%c0, %c0_0], %0 {strides = array<i32>} : memref<144x144xf32, #tpu.memory_space<vmem>>, vector<16x144xf32>,
    %c128 = arith.constant 128 : index
    %c0_1 = arith.constant 0 : index
    %2 = vector.load %arg11[%c128, %c0_1] : memref<144x144xf32, #tpu.memory_space<vmem>>, vector<16x144xf32>
    tpu.vector_store %arg11[%c128, %c0_1], %0 {strides = array<i32>} : memref<144x144xf32, #tpu.memory_space<vmem>>, vector<16x144xf32>,
    %c0_2 = arith.constant 0 : index
    %c0_3 = arith.constant 0 : index
    %3 = vector.load %arg1[%c0_2, %c0_3] : memref<128x48xf32, #tpu.memory_space<vmem>>, vector<128x48xf32>
    %c16 = arith.constant 16 : index
    %c0_4 = arith.constant 0 : index
    %4 = vector.load %arg11[%c16, %c0_4] : memref<144x144xf32, #tpu.memory_space<vmem>>, vector<128x48xf32>
    tpu.vector_store %arg11[%c16, %c0_4], %3 {strides = array<i32>} : memref<144x144xf32, #tpu.memory_space<vmem>>, vector<128x48xf32>,
    %c0_5 = arith.constant 0 : index
    %c0_6 = arith.constant 0 : index
    %5 = vector.load %arg1[%c0_5, %c0_6] : memref<128x48xf32, #tpu.memory_space<vmem>>, vector<128x48xf32>
    %c8 = arith.constant 8 : index
    %c48 = arith.constant 48 : index
    %6 = vector.load %arg11[%c8, %c48] : memref<144x144xf32, #tpu.memory_space<vmem>>, vector<128x48xf32>
    tpu.vector_store %arg11[%c8, %c48], %5 {strides = array<i32>} : memref<144x144xf32, #tpu.memory_space<vmem>>, vector<128x48xf32>,
    %c0_7 = arith.constant 0 : index
    %c0_8 = arith.constant 0 : index
    %7 = vector.load %arg1[%c0_7, %c0_8] : memref<128x48xf32, #tpu.memory_space<vmem>>, vector<128x48xf32>
    %c0_9 = arith.constant 0 : index
    %c96 = arith.constant 96 : index
    %8 = vector.load %arg11[%c0_9, %c96] : memref<144x144xf32, #tpu.memory_space<vmem>>, vector<128x48xf32>
    tpu.vector_store %arg11[%c0_9, %c96], %7 {strides = array<i32>} : memref<144x144xf32, #tpu.memory_space<vmem>>, vector<128x48xf32>,
    %c8_10 = arith.constant 8 : index
    %c0_11 = arith.constant 0 : index
    %9 = vector.load %arg11[%c8_10, %c0_11] : memref<144x144xf32, #tpu.memory_space<vmem>>, vector<128x144xf32>
    %c0_12 = arith.constant 0 : index
    %c0_13 = arith.constant 0 : index
    %10 = vector.load %arg2[%c0_12, %c0_13] : memref<144x256xf32, #tpu.memory_space<vmem>>, vector<144x256xf32>
    %cst_14 = arith.constant dense<0.000000e+00> : vector<128x256xf32>
    %11 = tpu.matmul %9, %10, %cst_14 {dimension_numbers = #tpu.dot_dimension_numbers<[1], [0], [0], [1], [0, 0, 1, 1], [], []>} : vector<128x144xf32>, vector<144x256xf32>, vector<128x256xf32> -> vector<128x256xf32>
    %c0_15 = arith.constant 0 : index
    %c0_16 = arith.constant 0 : index
    %12 = vector.load %arg3[%c0_15, %c0_16] : memref<1x256xf32, #tpu.memory_space<vmem>>, vector<1x256xf32>
    %13 = vector.broadcast %12 : vector<1x256xf32> to vector<128x256xf32>
    %14 = arith.addf %11, %13 : vector<128x256xf32>
    %cst_17 = arith.constant 0.000000e+00 : f32
    %15 = vector.broadcast %cst_17 : f32 to vector<128x256xf32>
    %16 = arith.maximumf %14, %15 : vector<128x256xf32>
    %c0_18 = arith.constant 0 : index
    %c0_19 = arith.constant 0 : index
    %17 = vector.load %arg12[%c0_18, %c0_19] : memref<128x256xf32, #tpu.memory_space<vmem>>, vector<128x256xf32>
    tpu.vector_store %arg12[%c0_18, %c0_19], %16 {strides = array<i32>} : memref<128x256xf32, #tpu.memory_space<vmem>>, vector<128x256xf32>,
    %cst_20 = arith.constant 0.000000e+00 : f32
    %18 = vector.broadcast %cst_20 : f32 to vector<16x384xf32>
    %c0_21 = arith.constant 0 : index
    %c0_22 = arith.constant 0 : index
    %19 = vector.load %arg13[%c0_21, %c0_22] : memref<80x384xf32, #tpu.memory_space<vmem>>, vector<16x384xf32>
    tpu.vector_store %arg13[%c0_21, %c0_22], %18 {strides = array<i32>} : memref<80x384xf32, #tpu.memory_space<vmem>>, vector<16x384xf32>,
    %c64 = arith.constant 64 : index
    %c0_23 = arith.constant 0 : index
    %20 = vector.load %arg13[%c64, %c0_23] : memref<80x384xf32, #tpu.memory_space<vmem>>, vector<16x384xf32>
    tpu.vector_store %arg13[%c64, %c0_23], %18 {strides = array<i32>} : memref<80x384xf32, #tpu.memory_space<vmem>>, vector<16x384xf32>,
    %c0_24 = arith.constant 0 : index
    %c0_25 = arith.constant 0 : index
    %21 = vector.load %arg12[%c0_24, %c0_25] : memref<128x256xf32, #tpu.memory_space<vmem>>, vector<8x128xf32>
    %c0_26 = arith.constant 0 : index
    %c128_27 = arith.constant 128 : index
    %22 = vector.load %arg12[%c0_26, %c128_27] : memref<128x256xf32, #tpu.memory_space<vmem>>, vector<8x128xf32>
    %23 = arith.maximumf %21, %22 : vector<8x128xf32>
    %c8_28 = arith.constant 8 : index
    %c0_29 = arith.constant 0 : index
    %24 = vector.load %arg12[%c8_28, %c0_29] : memref<128x256xf32, #tpu.memory_space<vmem>>, vector<8x128xf32>
    %c8_30 = arith.constant 8 : index
    %c128_31 = arith.constant 128 : index
    %25 = vector.load %arg12[%c8_30, %c128_31] : memref<128x256xf32, #tpu.memory_space<vmem>>, vector<8x128xf32>
    %26 = arith.maximumf %24, %25 : vector<8x128xf32>
    %27 = arith.maximumf %23, %26 : vector<8x128xf32>
    %c16_32 = arith.constant 16 : index
    %c0_33 = arith.constant 0 : index
    %28 = vector.load %arg13[%c16_32, %c0_33] : memref<80x384xf32, #tpu.memory_space<vmem>>, vector<8x128xf32>
    tpu.vector_store %arg13[%c16_32, %c0_33], %27 {strides = array<i32>} : memref<80x384xf32, #tpu.memory_space<vmem>>, vector<8x128xf32>,
    %c8_34 = arith.constant 8 : index
    %c128_35 = arith.constant 128 : index
    %29 = vector.load %arg13[%c8_34, %c128_35] : memref<80x384xf32, #tpu.memory_space<vmem>>, vector<8x128xf32>
    tpu.vector_store %arg13[%c8_34, %c128_35], %27 {strides = array<i32>} : memref<80x384xf32, #tpu.memory_space<vmem>>, vector<8x128xf32>,
    %c0_36 = arith.constant 0 : index
    %c256 = arith.constant 256 : index
    %30 = vector.load %arg13[%c0_36, %c256] : memref<80x384xf32, #tpu.memory_space<vmem>>, vector<8x128xf32>
    tpu.vector_store %arg13[%c0_36, %c256], %27 {strides = array<i32>} : memref<80x384xf32, #tpu.memory_space<vmem>>, vector<8x128xf32>,
    %c16_37 = arith.constant 16 : index
    %c0_38 = arith.constant 0 : index
    %31 = vector.load %arg12[%c16_37, %c0_38] : memref<128x256xf32, #tpu.memory_space<vmem>>, vector<8x128xf32>
    %c16_39 = arith.constant 16 : index
    %c128_40 = arith.constant 128 : index
    %32 = vector.load %arg12[%c16_39, %c128_40] : memref<128x256xf32, #tpu.memory_space<vmem>>, vector<8x128xf32>
    %33 = arith.maximumf %31, %32 : vector<8x128xf32>
    %c24 = arith.constant 24 : index
    %c0_41 = arith.constant 0 : index
    %34 = vector.load %arg12[%c24, %c0_41] : memref<128x256xf32, #tpu.memory_space<vmem>>, vector<8x128xf32>
    %c24_42 = arith.constant 24 : index
    %c128_43 = arith.constant 128 : index
    %35 = vector.load %arg12[%c24_42, %c128_43] : memref<128x256xf32, #tpu.memory_space<vmem>>, vector<8x128xf32>
    %36 = arith.maximumf %34, %35 : vector<8x128xf32>
    %37 = arith.maximumf %33, %36 : vector<8x128xf32>
    %c24_44 = arith.constant 24 : index
    %c0_45 = arith.constant 0 : index
    %38 = vector.load %arg13[%c24_44, %c0_45] : memref<80x384xf32, #tpu.memory_space<vmem>>, vector<8x128xf32>
    tpu.vector_store %arg13[%c24_44, %c0_45], %37 {strides = array<i32>} : memref<80x384xf32, #tpu.memory_space<vmem>>, vector<8x128xf32>,
    %c16_46 = arith.constant 16 : index
    %c128_47 = arith.constant 128 : index
    %39 = vector.load %arg13[%c16_46, %c128_47] : memref<80x384xf32, #tpu.memory_space<vmem>>, vector<8x128xf32>
    tpu.vector_store %arg13[%c16_46, %c128_47], %37 {strides = array<i32>} : memref<80x384xf32, #tpu.memory_space<vmem>>, vector<8x128xf32>,
    %c8_48 = arith.constant 8 : index
    %c256_49 = arith.constant 256 : index
    %40 = vector.load %arg13[%c8_48, %c256_49] : memref<80x384xf32, #tpu.memory_space<vmem>>, vector<8x128xf32>
    tpu.vector_store %arg13[%c8_48, %c256_49], %37 {strides = array<i32>} : memref<80x384xf32, #tpu.memory_space<vmem>>, vector<8x128xf32>,
    %c32 = arith.constant 32 : index
    %c0_50 = arith.constant 0 : index
    %41 = vector.load %arg12[%c32, %c0_50] : memref<128x256xf32, #tpu.memory_space<vmem>>, vector<8x128xf32>
    %c32_51 = arith.constant 32 : index
    %c128_52 = arith.constant 128 : index
    %42 = vector.load %arg12[%c32_51, %c128_52] : memref<128x256xf32, #tpu.memory_space<vmem>>, vector<8x128xf32>
    %43 = arith.maximumf %41, %42 : vector<8x128xf32>
    %c40 = arith.constant 40 : index
    %c0_53 = arith.constant 0 : index
    %44 = vector.load %arg12[%c40, %c0_53] : memref<128x256xf32, #tpu.memory_space<vmem>>, vector<8x128xf32>
    %c40_54 = arith.constant 40 : index
    %c128_55 = arith.constant 128 : index
    %45 = vector.load %arg12[%c40_54, %c128_55] : memref<128x256xf32, #tpu.memory_space<vmem>>, vector<8x128xf32>
    %46 = arith.maximumf %44, %45 : vector<8x128xf32>
    %47 = arith.maximumf %43, %46 : vector<8x128xf32>
    %c32_56 = arith.constant 32 : index
    %c0_57 = arith.constant 0 : index
    %48 = vector.load %arg13[%c32_56, %c0_57] : memref<80x384xf32, #tpu.memory_space<vmem>>, vector<8x128xf32>
    tpu.vector_store %arg13[%c32_56, %c0_57], %47 {strides = array<i32>} : memref<80x384xf32, #tpu.memory_space<vmem>>, vector<8x128xf32>,
    %c24_58 = arith.constant 24 : index
    %c128_59 = arith.constant 128 : index
    %49 = vector.load %arg13[%c24_58, %c128_59] : memref<80x384xf32, #tpu.memory_space<vmem>>, vector<8x128xf32>
    tpu.vector_store %arg13[%c24_58, %c128_59], %47 {strides = array<i32>} : memref<80x384xf32, #tpu.memory_space<vmem>>, vector<8x128xf32>,
    %c16_60 = arith.constant 16 : index
    %c256_61 = arith.constant 256 : index
    %50 = vector.load %arg13[%c16_60, %c256_61] : memref<80x384xf32, #tpu.memory_space<vmem>>, vector<8x128xf32>
    tpu.vector_store %arg13[%c16_60, %c256_61], %47 {strides = array<i32>} : memref<80x384xf32, #tpu.memory_space<vmem>>, vector<8x128xf32>,
    %c48_62 = arith.constant 48 : index
    %c0_63 = arith.constant 0 : index
    %51 = vector.load %arg12[%c48_62, %c0_63] : memref<128x256xf32, #tpu.memory_space<vmem>>, vector<8x128xf32>
    %c48_64 = arith.constant 48 : index
    %c128_65 = arith.constant 128 : index
    %52 = vector.load %arg12[%c48_64, %c128_65] : memref<128x256xf32, #tpu.memory_space<vmem>>, vector<8x128xf32>
    %53 = arith.maximumf %51, %52 : vector<8x128xf32>
    %c56 = arith.constant 56 : index
    %c0_66 = arith.constant 0 : index
    %54 = vector.load %arg12[%c56, %c0_66] : memref<128x256xf32, #tpu.memory_space<vmem>>, vector<8x128xf32>
    %c56_67 = arith.constant 56 : index
    %c128_68 = arith.constant 128 : index
    %55 = vector.load %arg12[%c56_67, %c128_68] : memref<128x256xf32, #tpu.memory_space<vmem>>, vector<8x128xf32>
    %56 = arith.maximumf %54, %55 : vector<8x128xf32>
    %57 = arith.maximumf %53, %56 : vector<8x128xf32>
    %c40_69 = arith.constant 40 : index
    %c0_70 = arith.constant 0 : index
    %58 = vector.load %arg13[%c40_69, %c0_70] : memref<80x384xf32, #tpu.memory_space<vmem>>, vector<8x128xf32>
    tpu.vector_store %arg13[%c40_69, %c0_70], %57 {strides = array<i32>} : memref<80x384xf32, #tpu.memory_space<vmem>>, vector<8x128xf32>,
    %c32_71 = arith.constant 32 : index
    %c128_72 = arith.constant 128 : index
    %59 = vector.load %arg13[%c32_71, %c128_72] : memref<80x384xf32, #tpu.memory_space<vmem>>, vector<8x128xf32>
    tpu.vector_store %arg13[%c32_71, %c128_72], %57 {strides = array<i32>} : memref<80x384xf32, #tpu.memory_space<vmem>>, vector<8x128xf32>,
    %c24_73 = arith.constant 24 : index
    %c256_74 = arith.constant 256 : index
    %60 = vector.load %arg13[%c24_73, %c256_74] : memref<80x384xf32, #tpu.memory_space<vmem>>, vector<8x128xf32>
    tpu.vector_store %arg13[%c24_73, %c256_74], %57 {strides = array<i32>} : memref<80x384xf32, #tpu.memory_space<vmem>>, vector<8x128xf32>,
    %c64_75 = arith.constant 64 : index
    %c0_76 = arith.constant 0 : index
    %61 = vector.load %arg12[%c64_75, %c0_76] : memref<128x256xf32, #tpu.memory_space<vmem>>, vector<8x128xf32>
    %c64_77 = arith.constant 64 : index
    %c128_78 = arith.constant 128 : index
    %62 = vector.load %arg12[%c64_77, %c128_78] : memref<128x256xf32, #tpu.memory_space<vmem>>, vector<8x128xf32>
    %63 = arith.maximumf %61, %62 : vector<8x128xf32>
    %c72 = arith.constant 72 : index
    %c0_79 = arith.constant 0 : index
    %64 = vector.load %arg12[%c72, %c0_79] : memref<128x256xf32, #tpu.memory_space<vmem>>, vector<8x128xf32>
    %c72_80 = arith.constant 72 : index
    %c128_81 = arith.constant 128 : index
    %65 = vector.load %arg12[%c72_80, %c128_81] : memref<128x256xf32, #tpu.memory_space<vmem>>, vector<8x128xf32>
    %66 = arith.maximumf %64, %65 : vector<8x128xf32>
    %67 = arith.maximumf %63, %66 : vector<8x128xf32>
    %c48_82 = arith.constant 48 : index
    %c0_83 = arith.constant 0 : index
    %68 = vector.load %arg13[%c48_82, %c0_83] : memref<80x384xf32, #tpu.memory_space<vmem>>, vector<8x128xf32>
    tpu.vector_store %arg13[%c48_82, %c0_83], %67 {strides = array<i32>} : memref<80x384xf32, #tpu.memory_space<vmem>>, vector<8x128xf32>,
    %c40_84 = arith.constant 40 : index
    %c128_85 = arith.constant 128 : index
    %69 = vector.load %arg13[%c40_84, %c128_85] : memref<80x384xf32, #tpu.memory_space<vmem>>, vector<8x128xf32>
    tpu.vector_store %arg13[%c40_84, %c128_85], %67 {strides = array<i32>} : memref<80x384xf32, #tpu.memory_space<vmem>>, vector<8x128xf32>,
    %c32_86 = arith.constant 32 : index
    %c256_87 = arith.constant 256 : index
    %70 = vector.load %arg13[%c32_86, %c256_87] : memref<80x384xf32, #tpu.memory_space<vmem>>, vector<8x128xf32>
    tpu.vector_store %arg13[%c32_86, %c256_87], %67 {strides = array<i32>} : memref<80x384xf32, #tpu.memory_space<vmem>>, vector<8x128xf32>,
    %c80 = arith.constant 80 : index
    %c0_88 = arith.constant 0 : index
    %71 = vector.load %arg12[%c80, %c0_88] : memref<128x256xf32, #tpu.memory_space<vmem>>, vector<8x128xf32>
    %c80_89 = arith.constant 80 : index
    %c128_90 = arith.constant 128 : index
    %72 = vector.load %arg12[%c80_89, %c128_90] : memref<128x256xf32, #tpu.memory_space<vmem>>, vector<8x128xf32>
    %73 = arith.maximumf %71, %72 : vector<8x128xf32>
    %c88 = arith.constant 88 : index
    %c0_91 = arith.constant 0 : index
    %74 = vector.load %arg12[%c88, %c0_91] : memref<128x256xf32, #tpu.memory_space<vmem>>, vector<8x128xf32>
    %c88_92 = arith.constant 88 : index
    %c128_93 = arith.constant 128 : index
    %75 = vector.load %arg12[%c88_92, %c128_93] : memref<128x256xf32, #tpu.memory_space<vmem>>, vector<8x128xf32>
    %76 = arith.maximumf %74, %75 : vector<8x128xf32>
    %77 = arith.maximumf %73, %76 : vector<8x128xf32>
    %c56_94 = arith.constant 56 : index
    %c0_95 = arith.constant 0 : index
    %78 = vector.load %arg13[%c56_94, %c0_95] : memref<80x384xf32, #tpu.memory_space<vmem>>, vector<8x128xf32>
    tpu.vector_store %arg13[%c56_94, %c0_95], %77 {strides = array<i32>} : memref<80x384xf32, #tpu.memory_space<vmem>>, vector<8x128xf32>,
    %c48_96 = arith.constant 48 : index
    %c128_97 = arith.constant 128 : index
    %79 = vector.load %arg13[%c48_96, %c128_97] : memref<80x384xf32, #tpu.memory_space<vmem>>, vector<8x128xf32>
    tpu.vector_store %arg13[%c48_96, %c128_97], %77 {strides = array<i32>} : memref<80x384xf32, #tpu.memory_space<vmem>>, vector<8x128xf32>,
    %c40_98 = arith.constant 40 : index
    %c256_99 = arith.constant 256 : index
    %80 = vector.load %arg13[%c40_98, %c256_99] : memref<80x384xf32, #tpu.memory_space<vmem>>, vector<8x128xf32>
    tpu.vector_store %arg13[%c40_98, %c256_99], %77 {strides = array<i32>} : memref<80x384xf32, #tpu.memory_space<vmem>>, vector<8x128xf32>,
    %c96_100 = arith.constant 96 : index
    %c0_101 = arith.constant 0 : index
    %81 = vector.load %arg12[%c96_100, %c0_101] : memref<128x256xf32, #tpu.memory_space<vmem>>, vector<8x128xf32>
    %c96_102 = arith.constant 96 : index
    %c128_103 = arith.constant 128 : index
    %82 = vector.load %arg12[%c96_102, %c128_103] : memref<128x256xf32, #tpu.memory_space<vmem>>, vector<8x128xf32>
    %83 = arith.maximumf %81, %82 : vector<8x128xf32>
    %c104 = arith.constant 104 : index
    %c0_104 = arith.constant 0 : index
    %84 = vector.load %arg12[%c104, %c0_104] : memref<128x256xf32, #tpu.memory_space<vmem>>, vector<8x128xf32>
    %c104_105 = arith.constant 104 : index
    %c128_106 = arith.constant 128 : index
    %85 = vector.load %arg12[%c104_105, %c128_106] : memref<128x256xf32, #tpu.memory_space<vmem>>, vector<8x128xf32>
    %86 = arith.maximumf %84, %85 : vector<8x128xf32>
    %87 = arith.maximumf %83, %86 : vector<8x128xf32>
    %c64_107 = arith.constant 64 : index
    %c0_108 = arith.constant 0 : index
    %88 = vector.load %arg13[%c64_107, %c0_108] : memref<80x384xf32, #tpu.memory_space<vmem>>, vector<8x128xf32>
    tpu.vector_store %arg13[%c64_107, %c0_108], %87 {strides = array<i32>} : memref<80x384xf32, #tpu.memory_space<vmem>>, vector<8x128xf32>,
    %c56_109 = arith.constant 56 : index
    %c128_110 = arith.constant 128 : index
    %89 = vector.load %arg13[%c56_109, %c128_110] : memref<80x384xf32, #tpu.memory_space<vmem>>, vector<8x128xf32>
    tpu.vector_store %arg13[%c56_109, %c128_110], %87 {strides = array<i32>} : memref<80x384xf32, #tpu.memory_space<vmem>>, vector<8x128xf32>,
    %c48_111 = arith.constant 48 : index
    %c256_112 = arith.constant 256 : index
    %90 = vector.load %arg13[%c48_111, %c256_112] : memref<80x384xf32, #tpu.memory_space<vmem>>, vector<8x128xf32>
    tpu.vector_store %arg13[%c48_111, %c256_112], %87 {strides = array<i32>} : memref<80x384xf32, #tpu.memory_space<vmem>>, vector<8x128xf32>,
    %c112 = arith.constant 112 : index
    %c0_113 = arith.constant 0 : index
    %91 = vector.load %arg12[%c112, %c0_113] : memref<128x256xf32, #tpu.memory_space<vmem>>, vector<8x128xf32>
    %c112_114 = arith.constant 112 : index
    %c128_115 = arith.constant 128 : index
    %92 = vector.load %arg12[%c112_114, %c128_115] : memref<128x256xf32, #tpu.memory_space<vmem>>, vector<8x128xf32>
    %93 = arith.maximumf %91, %92 : vector<8x128xf32>
    %c120 = arith.constant 120 : index
    %c0_116 = arith.constant 0 : index
    %94 = vector.load %arg12[%c120, %c0_116] : memref<128x256xf32, #tpu.memory_space<vmem>>, vector<8x128xf32>
    %c120_117 = arith.constant 120 : index
    %c128_118 = arith.constant 128 : index
    %95 = vector.load %arg12[%c120_117, %c128_118] : memref<128x256xf32, #tpu.memory_space<vmem>>, vector<8x128xf32>
    %96 = arith.maximumf %94, %95 : vector<8x128xf32>
    %97 = arith.maximumf %93, %96 : vector<8x128xf32>
    %c72_119 = arith.constant 72 : index
    %c0_120 = arith.constant 0 : index
    %98 = vector.load %arg13[%c72_119, %c0_120] : memref<80x384xf32, #tpu.memory_space<vmem>>, vector<8x128xf32>
    tpu.vector_store %arg13[%c72_119, %c0_120], %97 {strides = array<i32>} : memref<80x384xf32, #tpu.memory_space<vmem>>, vector<8x128xf32>,
    %c64_121 = arith.constant 64 : index
    %c128_122 = arith.constant 128 : index
    %99 = vector.load %arg13[%c64_121, %c128_122] : memref<80x384xf32, #tpu.memory_space<vmem>>, vector<8x128xf32>
    tpu.vector_store %arg13[%c64_121, %c128_122], %97 {strides = array<i32>} : memref<80x384xf32, #tpu.memory_space<vmem>>, vector<8x128xf32>,
    %c56_123 = arith.constant 56 : index
    %c256_124 = arith.constant 256 : index
    %100 = vector.load %arg13[%c56_123, %c256_124] : memref<80x384xf32, #tpu.memory_space<vmem>>, vector<8x128xf32>
    tpu.vector_store %arg13[%c56_123, %c256_124], %97 {strides = array<i32>} : memref<80x384xf32, #tpu.memory_space<vmem>>, vector<8x128xf32>,
    %c8_125 = arith.constant 8 : index
    %c0_126 = arith.constant 0 : index
    %101 = vector.load %arg13[%c8_125, %c0_126] : memref<80x384xf32, #tpu.memory_space<vmem>>, vector<64x384xf32>
    %c0_127 = arith.constant 0 : index
    %c0_128 = arith.constant 0 : index
    %102 = vector.load %arg4[%c0_127, %c0_128] : memref<384x256xf32, #tpu.memory_space<vmem>>, vector<384x256xf32>
    %cst_129 = arith.constant dense<0.000000e+00> : vector<64x256xf32>
    %103 = tpu.matmul %101, %102, %cst_129 {dimension_numbers = #tpu.dot_dimension_numbers<[1], [0], [0], [1], [0, 0, 1, 1], [], []>} : vector<64x384xf32>, vector<384x256xf32>, vector<64x256xf32> -> vector<64x256xf32>
    %c0_130 = arith.constant 0 : index
    %c0_131 = arith.constant 0 : index
    %104 = vector.load %arg5[%c0_130, %c0_131] : memref<1x256xf32, #tpu.memory_space<vmem>>, vector<1x256xf32>
    %105 = vector.broadcast %104 : vector<1x256xf32> to vector<64x256xf32>
    %106 = arith.addf %103, %105 : vector<64x256xf32>
    %cst_132 = arith.constant 0.000000e+00 : f32
    %107 = vector.broadcast %cst_132 : f32 to vector<64x256xf32>
    %108 = arith.maximumf %106, %107 : vector<64x256xf32>
    %c0_133 = arith.constant 0 : index
    %c0_134 = arith.constant 0 : index
    %109 = vector.load %arg14[%c0_133, %c0_134] : memref<64x256xf32, #tpu.memory_space<vmem>>, vector<64x256xf32>
    tpu.vector_store %arg14[%c0_133, %c0_134], %108 {strides = array<i32>} : memref<64x256xf32, #tpu.memory_space<vmem>>, vector<64x256xf32>,
    %c0_135 = arith.constant 0 : index
    %c0_136 = arith.constant 0 : index
    %110 = vector.load %arg14[%c0_135, %c0_136] : memref<64x256xf32, #tpu.memory_space<vmem>>, vector<8x128xf32>
    %c0_137 = arith.constant 0 : index
    %c128_138 = arith.constant 128 : index
    %111 = vector.load %arg14[%c0_137, %c128_138] : memref<64x256xf32, #tpu.memory_space<vmem>>, vector<8x128xf32>
    %112 = arith.maximumf %110, %111 : vector<8x128xf32>
    %c8_139 = arith.constant 8 : index
    %c0_140 = arith.constant 0 : index
    %113 = vector.load %arg14[%c8_139, %c0_140] : memref<64x256xf32, #tpu.memory_space<vmem>>, vector<8x128xf32>
    %c8_141 = arith.constant 8 : index
    %c128_142 = arith.constant 128 : index
    %114 = vector.load %arg14[%c8_141, %c128_142] : memref<64x256xf32, #tpu.memory_space<vmem>>, vector<8x128xf32>
    %115 = arith.maximumf %113, %114 : vector<8x128xf32>
    %116 = arith.maximumf %112, %115 : vector<8x128xf32>
    %c0_143 = arith.constant 0 : index
    %c0_144 = arith.constant 0 : index
    %117 = vector.load %arg15[%c0_143, %c0_144] : memref<8x512xf32, #tpu.memory_space<vmem>>, vector<8x128xf32>
    tpu.vector_store %arg15[%c0_143, %c0_144], %116 {strides = array<i32>} : memref<8x512xf32, #tpu.memory_space<vmem>>, vector<8x128xf32>,
    %c16_145 = arith.constant 16 : index
    %c0_146 = arith.constant 0 : index
    %118 = vector.load %arg14[%c16_145, %c0_146] : memref<64x256xf32, #tpu.memory_space<vmem>>, vector<8x128xf32>
    %c16_147 = arith.constant 16 : index
    %c128_148 = arith.constant 128 : index
    %119 = vector.load %arg14[%c16_147, %c128_148] : memref<64x256xf32, #tpu.memory_space<vmem>>, vector<8x128xf32>
    %120 = arith.maximumf %118, %119 : vector<8x128xf32>
    %c24_149 = arith.constant 24 : index
    %c0_150 = arith.constant 0 : index
    %121 = vector.load %arg14[%c24_149, %c0_150] : memref<64x256xf32, #tpu.memory_space<vmem>>, vector<8x128xf32>
    %c24_151 = arith.constant 24 : index
    %c128_152 = arith.constant 128 : index
    %122 = vector.load %arg14[%c24_151, %c128_152] : memref<64x256xf32, #tpu.memory_space<vmem>>, vector<8x128xf32>
    %123 = arith.maximumf %121, %122 : vector<8x128xf32>
    %124 = arith.maximumf %120, %123 : vector<8x128xf32>
    %c0_153 = arith.constant 0 : index
    %c128_154 = arith.constant 128 : index
    %125 = vector.load %arg15[%c0_153, %c128_154] : memref<8x512xf32, #tpu.memory_space<vmem>>, vector<8x128xf32>
    tpu.vector_store %arg15[%c0_153, %c128_154], %124 {strides = array<i32>} : memref<8x512xf32, #tpu.memory_space<vmem>>, vector<8x128xf32>,
    %c32_155 = arith.constant 32 : index
    %c0_156 = arith.constant 0 : index
    %126 = vector.load %arg14[%c32_155, %c0_156] : memref<64x256xf32, #tpu.memory_space<vmem>>, vector<8x128xf32>
    %c32_157 = arith.constant 32 : index
    %c128_158 = arith.constant 128 : index
    %127 = vector.load %arg14[%c32_157, %c128_158] : memref<64x256xf32, #tpu.memory_space<vmem>>, vector<8x128xf32>
    %128 = arith.maximumf %126, %127 : vector<8x128xf32>
    %c40_159 = arith.constant 40 : index
    %c0_160 = arith.constant 0 : index
    %129 = vector.load %arg14[%c40_159, %c0_160] : memref<64x256xf32, #tpu.memory_space<vmem>>, vector<8x128xf32>
    %c40_161 = arith.constant 40 : index
    %c128_162 = arith.constant 128 : index
    %130 = vector.load %arg14[%c40_161, %c128_162] : memref<64x256xf32, #tpu.memory_space<vmem>>, vector<8x128xf32>
    %131 = arith.maximumf %129, %130 : vector<8x128xf32>
    %132 = arith.maximumf %128, %131 : vector<8x128xf32>
    %c0_163 = arith.constant 0 : index
    %c256_164 = arith.constant 256 : index
    %133 = vector.load %arg15[%c0_163, %c256_164] : memref<8x512xf32, #tpu.memory_space<vmem>>, vector<8x128xf32>
    tpu.vector_store %arg15[%c0_163, %c256_164], %132 {strides = array<i32>} : memref<8x512xf32, #tpu.memory_space<vmem>>, vector<8x128xf32>,
    %c48_165 = arith.constant 48 : index
    %c0_166 = arith.constant 0 : index
    %134 = vector.load %arg14[%c48_165, %c0_166] : memref<64x256xf32, #tpu.memory_space<vmem>>, vector<8x128xf32>
    %c48_167 = arith.constant 48 : index
    %c128_168 = arith.constant 128 : index
    %135 = vector.load %arg14[%c48_167, %c128_168] : memref<64x256xf32, #tpu.memory_space<vmem>>, vector<8x128xf32>
    %136 = arith.maximumf %134, %135 : vector<8x128xf32>
    %c56_169 = arith.constant 56 : index
    %c0_170 = arith.constant 0 : index
    %137 = vector.load %arg14[%c56_169, %c0_170] : memref<64x256xf32, #tpu.memory_space<vmem>>, vector<8x128xf32>
    %c56_171 = arith.constant 56 : index
    %c128_172 = arith.constant 128 : index
    %138 = vector.load %arg14[%c56_171, %c128_172] : memref<64x256xf32, #tpu.memory_space<vmem>>, vector<8x128xf32>
    %139 = arith.maximumf %137, %138 : vector<8x128xf32>
    %140 = arith.maximumf %136, %139 : vector<8x128xf32>
    %c0_173 = arith.constant 0 : index
    %c384 = arith.constant 384 : index
    %141 = vector.load %arg15[%c0_173, %c384] : memref<8x512xf32, #tpu.memory_space<vmem>>, vector<8x128xf32>
    tpu.vector_store %arg15[%c0_173, %c384], %140 {strides = array<i32>} : memref<8x512xf32, #tpu.memory_space<vmem>>, vector<8x128xf32>,
    %c0_174 = arith.constant 0 : index
    %c0_175 = arith.constant 0 : index
    %142 = vector.load %arg15[%c0_174, %c0_175] : memref<8x512xf32, #tpu.memory_space<vmem>>, vector<8x512xf32>
    %c0_176 = arith.constant 0 : index
    %c0_177 = arith.constant 0 : index
    %143 = vector.load %arg6[%c0_176, %c0_177] : memref<512x64xf32, #tpu.memory_space<vmem>>, vector<512x64xf32>
    %cst_178 = arith.constant dense<0.000000e+00> : vector<8x64xf32>
    %144 = tpu.matmul %142, %143, %cst_178 {dimension_numbers = #tpu.dot_dimension_numbers<[1], [0], [0], [1], [0, 0, 1, 1], [], []>} : vector<8x512xf32>, vector<512x64xf32>, vector<8x64xf32> -> vector<8x64xf32>
    %c0_179 = arith.constant 0 : index
    %c0_180 = arith.constant 0 : index
    %145 = vector.load %arg7[%c0_179, %c0_180] : memref<1x64xf32, #tpu.memory_space<vmem>>, vector<1x64xf32>
    %146 = vector.broadcast %145 : vector<1x64xf32> to vector<8x64xf32>
    %147 = arith.addf %144, %146 : vector<8x64xf32>
    %cst_181 = arith.constant 0.000000e+00 : f32
    %148 = vector.broadcast %cst_181 : f32 to vector<8x64xf32>
    %149 = arith.maximumf %147, %148 : vector<8x64xf32>
    %c0_182 = arith.constant 0 : index
    %c0_183 = arith.constant 0 : index
    %150 = vector.load %arg8[%c0_182, %c0_183] : memref<1x64xf32, #tpu.memory_space<vmem>>, vector<1x64xf32>
    %151 = vector.broadcast %150 : vector<1x64xf32> to vector<8x64xf32>
    %152 = arith.mulf %149, %151 : vector<8x64xf32>
    %cst_184 = arith.constant dense<0.000000e+00> : vector<8xf32>
    %153 = vector.multi_reduction <add>, %152, %cst_184 [1] : vector<8x64xf32> to vector<8xf32>
    %154 = vector.shape_cast %153 : vector<8xf32> to vector<8x1xf32>
    %c0_185 = arith.constant 0 : index
    %c0_186 = arith.constant 0 : index
    %155 = vector.load %arg9[%c0_185, %c0_186] : memref<1x1xf32, #tpu.memory_space<vmem>>, vector<1x1xf32>
    %156 = vector.broadcast %155 : vector<1x1xf32> to vector<8x1xf32>
    %157 = arith.addf %154, %156 : vector<8x1xf32>
    %c0_187 = arith.constant 0 : index
    %c0_188 = arith.constant 0 : index
    %158 = vector.load %arg10[%c0_187, %c0_188] : memref<8x1xf32, #tpu.memory_space<vmem>>, vector<8x1xf32>
    tpu.vector_store %arg10[%c0_187, %c0_188], %157 {strides = array<i32>} : memref<8x1xf32, #tpu.memory_space<vmem>>, vector<8x1xf32>,
    return
  }
  func.func @transform_0(%arg0: i32) -> (i32, i32) {
    %c0_i32 = arith.constant 0 : i32
    %c0_i32_0 = arith.constant 0 : i32
    return %arg0, %c0_i32 : i32, i32
  }
  func.func @transform_1(%arg0: i32) -> (i32, i32) {
    %c0_i32 = arith.constant 0 : i32
    %c0_i32_0 = arith.constant 0 : i32
    %c0_i32_1 = arith.constant 0 : i32
    return %c0_i32, %c0_i32_0 : i32, i32
  }
  func.func @transform_2(%arg0: i32) -> (i32, i32) {
    %c0_i32 = arith.constant 0 : i32
    %c0_i32_0 = arith.constant 0 : i32
    %c0_i32_1 = arith.constant 0 : i32
    return %c0_i32, %c0_i32_0 : i32, i32
  }
  func.func @transform_3(%arg0: i32) -> (i32, i32) {
    %c0_i32 = arith.constant 0 : i32
    %c0_i32_0 = arith.constant 0 : i32
    %c0_i32_1 = arith.constant 0 : i32
    return %c0_i32, %c0_i32_0 : i32, i32
  }
  func.func @transform_4(%arg0: i32) -> (i32, i32) {
    %c0_i32 = arith.constant 0 : i32
    %c0_i32_0 = arith.constant 0 : i32
    %c0_i32_1 = arith.constant 0 : i32
    return %c0_i32, %c0_i32_0 : i32, i32
  }
  func.func @transform_5(%arg0: i32) -> (i32, i32) {
    %c0_i32 = arith.constant 0 : i32
    %c0_i32_0 = arith.constant 0 : i32
    %c0_i32_1 = arith.constant 0 : i32
    return %c0_i32, %c0_i32_0 : i32, i32
  }
  func.func @transform_6(%arg0: i32) -> (i32, i32) {
    %c0_i32 = arith.constant 0 : i32
    %c0_i32_0 = arith.constant 0 : i32
    %c0_i32_1 = arith.constant 0 : i32
    return %c0_i32, %c0_i32_0 : i32, i32
  }
  func.func @transform_7(%arg0: i32) -> (i32, i32) {
    %c0_i32 = arith.constant 0 : i32
    %c0_i32_0 = arith.constant 0 : i32
    %c0_i32_1 = arith.constant 0 : i32
    return %c0_i32, %c0_i32_0 : i32, i32
  }
  func.func @transform_8(%arg0: i32) -> (i32, i32) {
    %c0_i32 = arith.constant 0 : i32
    %c0_i32_0 = arith.constant 0 : i32
    %c0_i32_1 = arith.constant 0 : i32
    return %c0_i32, %c0_i32_0 : i32, i32
  }
  func.func @transform_9(%arg0: i32) -> (i32, i32) {
    %c0_i32 = arith.constant 0 : i32
    %c0_i32_0 = arith.constant 0 : i32
    return %arg0, %c0_i32 : i32, i32
  }
}

</mosaic_0001>

<bundles_post_ra>
// kernel: apple_presence_classifier_forward.1
= control target key start
LH: loop header
LB: loop body
LE: loop exit
PB: predicated region body
PF: predicated region fallthrough
CT: control target
= control target key end

     0   :  { %s1472_s13 = smov 48   ;;  %s1473_s16 = smov 96   ;;  %v1474_v25 = vmov 0.0   ;;  %vm35_vm0 = vcmask 130048   ;;  %vm59_vm1 = vcmask 392192   ;;  %vm156_vm2 = vcmask 785792   ;;  %s2493_s0 = inlined_call_operand.vmem [shape: f32[128,48], index: 0, kind: input, shape index: {}]   ;;  %s2494_s1 = inlined_call_operand.vmem [shape: f32[144,256], index: 1, kind: input, shape index: {}]   ;;  %s2495_s3 = inlined_call_operand.vmem [shape: f32[384,256], index: 3, kind: input, shape index: {}]   ;;  %s2496_s2 = inlined_call_operand.vmem [shape: f32[1,256], index: 2, kind: input, shape index: {}]   ;;  %s2497_s4 = inlined_call_operand.vmem [shape: f32[1,256], index: 4, kind: input, shape index: {}]   ;;  %s2498_s6 = inlined_call_operand.vmem [shape: f32[1,64], index: 6, kind: input, shape index: {}]   ;;  %s2499_s5 = inlined_call_operand.vmem [shape: f32[512,64], index: 5, kind: input, shape index: {}]   ;;  %s2500_s7 = inlined_call_operand.vmem [shape: f32[1,64], index: 7, kind: input, shape index: {}]   ;;  %s2501_s8 = inlined_call_operand.<no memory space> [shape: f32[1,1], index: 8, kind: input, shape index: {}]   ;;  %s2502_s9 = inlined_call_operand.vmem [shape: f32[8,1], index: 9, kind: output, shape index: {}]  }
   0x1   :  { %v1528_v0 = vld [vmem:[%s2493_s0] sm:$0xff]  ;;  %v1533_v1 = vld [vmem:[%s2493_s0 + $0x8] sm:$0xff]  ;;  %v1542_v2 = vld [vmem:[%s2493_s0 + $0x10] sm:$0xff]  ;;  %37 = vst [vmem:[#allocation2 + $0x10] sm:$0xff] %v1474_v25  ;;  %vm253_vm3 = vcmask 1048320   ;;  %vm1418_vm4 = vcmask 523264  }
   0x2   :  { %108 = vrot.lane.b32.xlu0 %v1528_v0, %s1472_s13  ;;  %110 = vrot.lane.b32.xlu1 %v1533_v1, %s1472_s13  ;;  %v1553_v3 = vld [vmem:[%s2493_s0 + $0x18] sm:$0xff]  ;;  %v1560_v4 = vld [vmem:[%s2493_s0 + $0x20] sm:$0xff]  ;;  %34 = vst [vmem:[#allocation2] sm:$0xff] %v1474_v25  ;;  %vm1427_vm5 = vcmask 7168  }
   0x3   :  { %112 = vrot.lane.b32.xlu2 %v1542_v2, %s1472_s13  ;;  %v1571_v5 = vld [vmem:[%s2493_s0 + $0x28] sm:$0xff]  ;;  %v1576_v6 = vld [vmem:[%s2493_s0 + $0x30] sm:$0xff]  ;;  %v349_v8 = vld [vmem:[%s2494_s1 + $0xf8] sm:$0xff]  ;;  %38 = vst.msk [vmem:[#allocation2 + $0x18] sm:$0xff] %vm35_vm0, %v1474_v25 }
   0x4   :  { %v348_v7 = vld [vmem:[%s2494_s1 + $0xf0] sm:$0xff]  ;;  %v346_v9 = vld [vmem:[%s2494_s1 + $0xe0] sm:$0xff]  ;;  %v347_v10 = vld [vmem:[%s2494_s1 + $0xe8] sm:$0xff]  ;;  %538 = vmatpush.msra.mxu2 %v349_v8  ;;  %39 = vst [vmem:[#allocation2 + $0x100] sm:$0xff] %v1474_v25 }
   0x5   :  { %408 = vmatpush.msra.mxu0 %v348_v7  ;;  %v180_v11 = vld [vmem:[%s2493_s0 + $0x38] sm:$0xff]  ;;  %v344_v12 = vld [vmem:[%s2494_s1 + $0xd0] sm:$0xff]  ;;  %v342_v14 = vld [vmem:[%s2494_s1 + $0xc0] sm:$0xff]  ;;  %40 = vst.msk [vmem:[#allocation2 + $0x108] sm:$0xff] %vm35_vm0, %v1474_v25 }
   0x6   :  { %539 = vmatpush.msra.mxu2 %v347_v10  ;;  %v345_v13 = vld [vmem:[%s2494_s1 + $0xd8] sm:$0xff]  ;;  %v343_v15 = vld [vmem:[%s2494_s1 + $0xc8] sm:$0xff]  ;;  %v340_v16 = vld [vmem:[%s2494_s1 + $0xb0] sm:$0xff]  ;;  %60 = vst.msk [vmem:[#allocation2 + $0x20] sm:$0xff] %vm59_vm1, %v1528_v0 }
   0x7   :  { %409 = vmatpush.msra.mxu0 %v346_v9  ;;  %v341_v17 = vld [vmem:[%s2494_s1 + $0xb8] sm:$0xff]  ;;  %v338_v18 = vld [vmem:[%s2494_s1 + $0xa0] sm:$0xff]  ;;  %v339_v20 = vld [vmem:[%s2494_s1 + $0xa8] sm:$0xff]  ;;  %61 = vst.msk [vmem:[#allocation2 + $0x30] sm:$0xff] %vm59_vm1, %v1533_v1 }
   0x8   :  { %540 = vmatpush.msra.mxu2 %v345_v13  ;;  %v181_v19 = vld [vmem:[%s2493_s0 + $0x40] sm:$0xff]  ;;  %v336_v21 = vld [vmem:[%s2494_s1 + $0x90] sm:$0xff]  ;;  %v85_v22 = vld [vmem:[%s2493_s0 + $0x48] sm:$0xff]  ;;  %62 = vst.msk [vmem:[#allocation2 + $0x40] sm:$0xff] %vm59_vm1, %v1542_v2 }
   0x9   :  { %410 = vmatpush.msra.mxu0 %v344_v12  ;;  %v337_v23 = vld [vmem:[%s2494_s1 + $0x98] sm:$0xff]  ;;  %v334_v24 = vld [vmem:[%s2494_s1 + $0x80] sm:$0xff]  ;;  %v335_v26 = vld [vmem:[%s2494_s1 + $0x88] sm:$0xff]  ;;  %63 = vst.msk [vmem:[#allocation2 + $0x50] sm:$0xff] %vm59_vm1, %v1553_v3 }
   0xa   :  { %207 = vrot.lane.b32.xlu0 %v1533_v1, %s1473_s16  ;;  %209 = vrot.lane.b32.xlu1 %v1542_v2, %s1473_s16  ;;  %v183_v27 = vld [vmem:[%s2493_s0 + $0x50] sm:$0xff]  ;;  %v184_v28 = vld [vmem:[%s2493_s0 + $0x58] sm:$0xff]  ;;  %64 = vst.msk [vmem:[#allocation2 + $0x60] sm:$0xff] %vm59_vm1, %v1560_v4 }
   0xb   :  { %211 = vrot.lane.b32.xlu2 %v1553_v3, %s1473_s16  ;;  %411 = vmatpush.msra.mxu0 %v342_v14  ;;  %65 = vst.msk [vmem:[#allocation2 + $0x70] sm:$0xff] %vm59_vm1, %v1571_v5  ;;  %v88_v29 = vld [vmem:[%s2493_s0 + $0x60] sm:$0xff]  ;;  %v186_v30 = vld [vmem:[%s2493_s0 + $0x68] sm:$0xff]  ;;  %v187_v31 = vld [vmem:[%s2493_s0 + $0x70] sm:$0xff] }
   0xc   :  { %541 = vmatpush.msra.mxu2 %v343_v15  ;;  %66 = vst.msk [vmem:[#allocation2 + $0x80] sm:$0xff] %vm59_vm1, %v1576_v6  ;;  %v58_v32 = vld [vmem:[%s2493_s0 + $0x78] sm:$0xff]  ;;  %v332_v33 = vld [vmem:[%s2494_s1 + $0x70] sm:$0xff]  ;;  %v330_v35 = vld [vmem:[%s2494_s1 + $0x60] sm:$0xff] }
   0xd   :  { %412 = vmatpush.msra.mxu0 %v340_v16  ;;  %67 = vst.msk [vmem:[#allocation2 + $0x90] sm:$0xff] %vm59_vm1, %v180_v11  ;;  %v333_v34 = vld [vmem:[%s2494_s1 + $0x78] sm:$0xff]  ;;  %v331_v36 = vld [vmem:[%s2494_s1 + $0x68] sm:$0xff]  ;;  %v328_v37 = vld [vmem:[%s2494_s1 + $0x50] sm:$0xff] }
   0xe   :  { %542 = vmatpush.msra.mxu2 %v341_v17  ;;  %68 = vst.msk [vmem:[#allocation2 + $0xa0] sm:$0xff] %vm59_vm1, %v181_v19  ;;  %v329_v38 = vld [vmem:[%s2494_s1 + $0x58] sm:$0xff]  ;;  %v326_v39 = vld [vmem:[%s2494_s1 + $0x40] sm:$0xff]  ;;  %v327_v40 = vld [vmem:[%s2494_s1 + $0x48] sm:$0xff] }
   0xf   :  { %413 = vmatpush.msra.mxu0 %v338_v18  ;;  %69 = vst.msk [vmem:[#allocation2 + $0xb0] sm:$0xff] %vm59_vm1, %v85_v22  ;;  %v324_v41 = vld [vmem:[%s2494_s1 + $0x30] sm:$0xff]  ;;  %v325_v42 = vld [vmem:[%s2494_s1 + $0x38] sm:$0xff]  ;;  %v322_v43 = vld [vmem:[%s2494_s1 + $0x20] sm:$0xff] }
  0x10   :  { %543 = vmatpush.msra.mxu2 %v339_v20  ;;  %70 = vst.msk [vmem:[#allocation2 + $0xc0] sm:$0xff] %vm59_vm1, %v183_v27  ;;  %v323_v45 = vld [vmem:[%s2494_s1 + $0x28] sm:$0xff]  ;;  %v352_v46 = vld [vmem:[%s2494_s1 + $0x110] sm:$0xff]  ;;  %v321_v48 = vld [vmem:[%s2494_s1 + $0x18] sm:$0xff] }
  0x11   :  { %414 = vmatpush.msra.mxu0 %v336_v21  ;;  %71 = vst.msk [vmem:[#allocation2 + $0xd0] sm:$0xff] %vm59_vm1, %v184_v28  ;;  %v320_v47 = vld [vmem:[%s2494_s1 + $0x10] sm:$0xff]  ;;  %487 = vmatpush.msra.mxu1 %v352_v46  ;;  %v353_v49 = vld [vmem:[%s2494_s1 + $0x118] sm:$0xff]  ;;  %v350_v50 = vld [vmem:[%s2494_s1 + $0x100] sm:$0xff] }
  0x12   :  { %114 = vrot.lane.b32.xlu0 %v1553_v3, %s1472_s13  ;;  %213 = vrot.lane.b32.xlu1 %v1560_v4, %s1473_s16  ;;  %72 = vst.msk [vmem:[#allocation2 + $0xe0] sm:$0xff] %vm59_vm1, %v88_v29  ;;  %v351_v51 = vld [vmem:[%s2494_s1 + $0x108] sm:$0xff]  ;;  %v318_v52 = vld [vmem:[%s2494_s1] sm:$0xff] }
  0x13   :  { %116 = vrot.lane.b32.xlu2 %v1560_v4, %s1472_s13  ;;  %544 = vmatpush.msra.mxu2 %v337_v23  ;;  %73 = vst.msk [vmem:[#allocation2 + $0xf0] sm:$0xff] %vm59_vm1, %v186_v30  ;;  %v319_v53 = vld [vmem:[%s2494_s1 + $0x8] sm:$0xff]  ;;  %v910_v23 = vld [vmem:[%s2495_s3 + $0x1f0] sm:$0xff] }
  0x14   :  { %415 = vmatpush.msra.mxu0 %v334_v24  ;;  %74 = vst.msk [vmem:[#allocation2 + $0x100] sm:$0xff] %vm59_vm1, %v187_v31  ;;  %617 = vmatpush.msra.mxu3 %v353_v49  ;;  %v879_v49 = vld [vmem:[%s2495_s3 + $0xf8] sm:$0xff] }
  0x15   :  { %545 = vmatpush.msra.mxu2 %v335_v26  ;;  %488 = vmatpush.msra.mxu1 %v350_v50 }
  0x16   :  { %416 = vmatpush.msra.mxu0 %v332_v33  ;;  %618 = vmatpush.msra.mxu3 %v351_v51 }
  0x17   :  { %546 = vmatpush.msra.mxu2 %v333_v34 }
  0x18   :  { %417 = vmatpush.msra.mxu0 %v330_v35  ;;  %991 = vmatpush.msrb.mxu3 %v910_v23  ;;  %v876_v35 = vld [vmem:[%s2495_s3 + $0xe0] sm:$0xff] }
  0x19   :  { %547 = vmatpush.msra.mxu2 %v331_v36  ;;  %v906_v36 = vld [vmem:[%s2495_s3 + $0x1d0] sm:$0xff]  ;;  %v852_v23 = vld [vmem:[%s2495_s3 + $0x20] sm:$0xff] }
  0x1a   :  { %215 = vrot.lane.b32.xlu0 %v1571_v5, %s1473_s16  ;;  %118 = vrot.lane.b32.xlu1 %v1571_v5, %s1472_s13 }
  0x1b   :  { %217 = vrot.lane.b32.xlu2 %v1576_v6, %s1473_s16  ;;  %418 = vmatpush.msra.mxu0 %v328_v37 }
  0x1c   :  { %548 = vmatpush.msra.mxu2 %v329_v38 }
  0x1d   :  { %419 = vmatpush.msra.mxu0 %v326_v39 }
  0x1e   :  { %549 = vmatpush.msra.mxu2 %v327_v40 }
  0x1f   :  { %420 = vmatpush.msra.mxu0 %v324_v41  ;;  %v874_v41 = vld [vmem:[%s2495_s3 + $0xd0] sm:$0xff] }
  0x20   :  { %550 = vmatpush.msra.mxu2 %v325_v42  ;;  %v904_v42 = vld [vmem:[%s2495_s3 + $0x1c0] sm:$0xff] }
  0x21   :  { %421 = vmatpush.msra.mxu0 %v322_v43 }
  0x22   :  { %120 = vrot.lane.b32.xlu0 %v1576_v6, %s1472_s13  ;;  %219 = vrot.lane.b32.xlu1 %v180_v11, %s1473_s16 }
  0x23   :  { %122 = vrot.lane.b32.xlu2 %v180_v11, %s1472_s13  ;;  %551 = vmatpush.msra.mxu2 %v323_v45 }
  0x24   :  { %422 = vmatpush.msra.mxu0 %v320_v47  ;;  %v872_v47 = vld [vmem:[%s2495_s3 + $0xc0] sm:$0xff] }
  0x25   :  { %552 = vmatpush.msra.mxu2 %v321_v48  ;;  %v902_v48 = vld [vmem:[%s2495_s3 + $0x1b0] sm:$0xff] }
  0x26   :  { %423 = vmatpush.msra.mxu0 %v318_v52 }
  0x27   :  { %553 = vmatpush.msra.mxu2 %v319_v53  ;;  %v877_v53 = vld [vmem:[%s2495_s3 + $0xe8] sm:$0xff] }
  0x29   :  { %1073 = vmatpush.msrb.mxu2 %v879_v49 }
  0x2a   :  { %221 = vrot.lane.b32.xlu0 %v181_v19, %s1473_s16  ;;  %124 = vrot.lane.b32.xlu1 %v181_v19, %s1472_s13 }
  0x2b   :  { %223 = vrot.lane.b32.xlu2 %v85_v22, %s1473_s16  ;;  %1074 = vmatpush.msrb.mxu2 %v877_v53 }
  0x32   :  { %126 = vrot.lane.b32.xlu0 %v85_v22, %s1472_s13  ;;  %225 = vrot.lane.b32.xlu1 %v183_v27, %s1473_s16 }
  0x33   :  { %128 = vrot.lane.b32.xlu2 %v183_v27, %s1472_s13 }
  0x3a   :  { %227 = vrot.lane.b32.xlu0 %v184_v28, %s1473_s16  ;;  %130 = vrot.lane.b32.xlu1 %v184_v28, %s1472_s13 }
  0x3b   :  { %229 = vrot.lane.b32.xlu2 %v88_v29, %s1473_s16 }
  0x42   :  { %132 = vrot.lane.b32.xlu0 %v88_v29, %s1472_s13  ;;  %231 = vrot.lane.b32.xlu1 %v186_v30, %s1473_s16  ;;  %v878_v29 = vld [vmem:[%s2495_s3 + $0xf0] sm:$0xff] }
  0x43   :  { %134 = vrot.lane.b32.xlu2 %v186_v30, %s1472_s13  ;;  %v908_v30 = vld [vmem:[%s2495_s3 + $0x1e0] sm:$0xff]  ;;  %950 = vmatpush.msrb.mxu1 %v878_v29  ;;  %v853_v29 = vld [vmem:[%s2495_s3 + $0x28] sm:$0xff] }
  0x44   :  { %992 = vmatpush.msrb.mxu3 %v908_v30  ;;  %v850_v30 = vld [vmem:[%s2495_s3 + $0x10] sm:$0xff] }
  0x45   :  { %951 = vmatpush.msrb.mxu1 %v876_v35  ;;  %v886_v35 = vld [vmem:[%s2495_s3 + $0x130] sm:$0xff] }
  0x46   :  { %993 = vmatpush.msrb.mxu3 %v906_v36  ;;  %v934_v36 = vld [vmem:[%s2495_s3 + $0x2b0] sm:$0xff] }
  0x47   :  { %952 = vmatpush.msrb.mxu1 %v874_v41  ;;  %v317_v41 = vld [vmem:[#allocation2 + $0x108] sm:$0xff] }
  0x48   :  { %994 = vmatpush.msrb.mxu3 %v904_v42  ;;  %v882_v42 = vld [vmem:[%s2495_s3 + $0x110] sm:$0xff] }
  0x49   :  { %953 = vmatpush.msrb.mxu1 %v872_v47 }
  0x4a   :  { %233 = vrot.lane.b32.xlu0 %v187_v31, %s1473_s16  ;;  %136 = vrot.lane.b32.xlu1 %v187_v31, %s1472_s13 }
  0x4b   :  { %235 = vrot.lane.b32.xlu2 %v58_v32, %s1473_s16  ;;  %995 = vmatpush.msrb.mxu3 %v902_v48  ;;  %v924_v48 = vld [vmem:[%s2495_s3 + $0x260] sm:$0xff] }
  0x52   :  { %138 = vrot.lane.b32.xlu0 %v58_v32, %s1472_s13 }
  0x5d   :  { %v113_v44 = vpop.permute.xlu2 %112 }
  0x5e   :  { %159 = vst.msk [vmem:[#allocation2 + $0x30] sm:$0xff] %vm156_vm2, %v113_v44 }
  0x65   :  { %v212_v54 = vpop.permute.xlu2 %211 }
  0x66   :  { %260 = vst.msk [vmem:[#allocation2 + $0x30] sm:$0xff] %vm253_vm3, %v212_v54 }
  0x67   :  { %261 = vst.msk [vmem:[#allocation2 + $0x38] sm:$0xff] %vm35_vm0, %v212_v54  ;;  %v870_v54 = vld [vmem:[%s2495_s3 + $0xb0] sm:$0xff] }
  0x68   :  { %954 = vmatpush.msrb.mxu1 %v870_v54 }
  0x6d   :  { %v117_v57 = vpop.permute.xlu2 %116  ;;  %v290_v6 = vld [vmem:[#allocation2 + $0x30] sm:$0xff] }
  0x6e   :  { %161 = vst.msk [vmem:[#allocation2 + $0x50] sm:$0xff] %vm156_vm2, %v117_v57  ;;  %v291_v7 = vld [vmem:[#allocation2 + $0x38] sm:$0xff]  ;;  %v873_v57 = vld [vmem:[%s2495_s3 + $0xc8] sm:$0xff] }
  0x74   :  { %v109_v55 = vpop.permute.xlu0 %108  ;;  %v111_v56 = vpop.permute.xlu1 %110 }
  0x75   :  { %157 = vst.msk [vmem:[#allocation2 + $0x10] sm:$0xff] %vm156_vm2, %v109_v55  ;;  %v218_v60 = vpop.permute.xlu2 %217  ;;  %v875_v55 = vld [vmem:[%s2495_s3 + $0xd8] sm:$0xff] }
  0x76   :  { %158 = vst.msk [vmem:[#allocation2 + $0x20] sm:$0xff] %vm156_vm2, %v111_v56  ;;  %v900_v56 = vld [vmem:[%s2495_s3 + $0x1a0] sm:$0xff]  ;;  %1075 = vmatpush.msrb.mxu2 %v875_v55  ;;  %v918_v55 = vld [vmem:[%s2495_s3 + $0x230] sm:$0xff] }
  0x77   :  { %267 = vst.msk [vmem:[#allocation2 + $0x68] sm:$0xff] %vm35_vm0, %v218_v60  ;;  %996 = vmatpush.msrb.mxu3 %v900_v56 }
  0x78   :  { %1076 = vmatpush.msrb.mxu2 %v873_v57 }
  0x7c   :  { %v208_v58 = vpop.permute.xlu0 %207  ;;  %v210_v59 = vpop.permute.xlu1 %209 }
  0x7d   :  { %256 = vst.msk [vmem:[#allocation2 + $0x10] sm:$0xff] %vm253_vm3, %v208_v58  ;;  %v123_v5 = vpop.permute.xlu2 %122 }
  0x7e   :  { %257 = vst.msk [vmem:[#allocation2 + $0x18] sm:$0xff] %vm35_vm0, %v208_v58  ;;  %v297_v21 = vld [vmem:[#allocation2 + $0x68] sm:$0xff] }
  0x7f   :  { %258 = vst.msk [vmem:[#allocation2 + $0x20] sm:$0xff] %vm253_vm3, %v210_v59 }
  0x80   :  { %259 = vst.msk [vmem:[#allocation2 + $0x28] sm:$0xff] %vm35_vm0, %v210_v59 }
  0x81   :  { %164 = vst.msk [vmem:[#allocation2 + $0x80] sm:$0xff] %vm156_vm2, %v123_v5  ;;  %v862_v5 = vld [vmem:[%s2495_s3 + $0x70] sm:$0xff] }
  0x84   :  { %v286_v61 = vld [vmem:[#allocation2 + $0x10] sm:$0xff]  ;;  %v115_v62 = vpop.permute.xlu0 %114  ;;  %v214_v63 = vpop.permute.xlu1 %213 }
  0x85   :  { %424 = vmatmul.f32.vlgmr.msra.gmra.mxu0 %v286_v61  ;;  %v287_v0 = vld [vmem:[#allocation2 + $0x18] sm:$0xff]  ;;  %554 = vmatmul.f32.vlgmr.msra.gmra.mxu2 %v286_v61  ;;  %160 = vst.msk [vmem:[#allocation2 + $0x40] sm:$0xff] %vm156_vm2, %v115_v62  ;;  %v224_v10 = vpop.permute.xlu2 %223  ;;  %v868_v61 = vld [vmem:[%s2495_s3 + $0xa0] sm:$0xff]  ;;  %v869_v62 = vld [vmem:[%s2495_s3 + $0xa8] sm:$0xff] }
  0x86   :  { %1433 = vmatmul.msk.f32.vlgmr.msra.gmra.mxu1 %vm35_vm0, %v287_v0  ;;  %1449 = vmatmul.msk.f32.vlgmr.msra.gmra.mxu3 %vm35_vm0, %v287_v0  ;;  %262 = vst.msk [vmem:[#allocation2 + $0x40] sm:$0xff] %vm253_vm3, %v214_v63  ;;  %v288_v1 = vld [vmem:[#allocation2 + $0x20] sm:$0xff]  ;;  %v867_v0 = vld [vmem:[%s2495_s3 + $0x98] sm:$0xff] }
  0x87   :  { %263 = vst.msk [vmem:[#allocation2 + $0x48] sm:$0xff] %vm35_vm0, %v214_v63  ;;  %v289_v2 = vld [vmem:[#allocation2 + $0x28] sm:$0xff]  ;;  %v866_v63 = vld [vmem:[%s2495_s3 + $0x90] sm:$0xff]  ;;  %955 = vmatpush.msrb.mxu1 %v868_v61 }
  0x88   :  { %273 = vst.msk [vmem:[#allocation2 + $0x98] sm:$0xff] %vm35_vm0, %v224_v10  ;;  %v914_v61 = vld [vmem:[%s2495_s3 + $0x210] sm:$0xff] }
  0x89   :  { %956 = vmatpush.msrb.mxu1 %v866_v63 }
  0x8c   :  { %v216_v3 = vpop.permute.xlu0 %215  ;;  %v119_v4 = vpop.permute.xlu1 %118 }
  0x8d   :  { %427 = vmatmul.f32.gmra.mxu0 %v288_v1  ;;  %557 = vmatmul.f32.gmra.mxu2 %v288_v1  ;;  %264 = vst.msk [vmem:[#allocation2 + $0x50] sm:$0xff] %vm253_vm3, %v216_v3  ;;  %v292_v11 = vld [vmem:[#allocation2 + $0x40] sm:$0xff]  ;;  %v129_v19 = vpop.permute.xlu2 %128 }
  0x8e   :  { %1434 = vmatmul.msk.f32.gmra.mxu1 %vm35_vm0, %v289_v2  ;;  %1450 = vmatmul.msk.f32.gmra.mxu3 %vm35_vm0, %v289_v2  ;;  %265 = vst.msk [vmem:[#allocation2 + $0x58] sm:$0xff] %vm35_vm0, %v216_v3  ;;  %v293_v12 = vld [vmem:[#allocation2 + $0x48] sm:$0xff]  ;;  %v864_v2 = vld [vmem:[%s2495_s3 + $0x80] sm:$0xff] }
  0x8f   :  { %162 = vst.msk [vmem:[#allocation2 + $0x60] sm:$0xff] %vm156_vm2, %v119_v4  ;;  %v303_v40 = vld [vmem:[#allocation2 + $0x98] sm:$0xff]  ;;  %957 = vmatpush.msrb.mxu1 %v864_v2  ;;  %v865_v4 = vld [vmem:[%s2495_s3 + $0x88] sm:$0xff] }
  0x90   :  { %266 = vst.msk [vmem:[#allocation2 + $0x60] sm:$0xff] %vm253_vm3, %v218_v60  ;;  %v871_v60 = vld [vmem:[%s2495_s3 + $0xb8] sm:$0xff] }
  0x91   :  { %167 = vst.msk [vmem:[#allocation2 + $0xb0] sm:$0xff] %vm156_vm2, %v129_v19  ;;  %1077 = vmatpush.msrb.mxu2 %v871_v60  ;;  %958 = vmatpush.msrb.mxu1 %v862_v5  ;;  %v854_v19 = vld [vmem:[%s2495_s3 + $0x30] sm:$0xff] }
  0x93   :  { %1078 = vmatpush.msrb.mxu2 %v869_v62 }
  0x94   :  { %v121_v8 = vpop.permute.xlu0 %120  ;;  %v220_v9 = vpop.permute.xlu1 %219  ;;  %v294_v15 = vld [vmem:[#allocation2 + $0x50] sm:$0xff] }
  0x95   :  { %430 = vmatmul.f32.gmra.mxu0 %v290_v6  ;;  %560 = vmatmul.f32.gmra.mxu2 %v290_v6  ;;  %163 = vst.msk [vmem:[#allocation2 + $0x70] sm:$0xff] %vm156_vm2, %v121_v8  ;;  %v295_v16 = vld [vmem:[#allocation2 + $0x58] sm:$0xff]  ;;  %v230_v26 = vpop.permute.xlu2 %229  ;;  %v898_v8 = vld [vmem:[%s2495_s3 + $0x190] sm:$0xff] }
  0x96   :  { %1435 = vmatmul.msk.f32.gmra.mxu1 %vm35_vm0, %v291_v7  ;;  %1451 = vmatmul.msk.f32.gmra.mxu3 %vm35_vm0, %v291_v7  ;;  %268 = vst.msk [vmem:[#allocation2 + $0x70] sm:$0xff] %vm253_vm3, %v220_v9  ;;  %v863_v6 = vld [vmem:[%s2495_s3 + $0x78] sm:$0xff]  ;;  %v860_v7 = vld [vmem:[%s2495_s3 + $0x60] sm:$0xff] }
  0x97   :  { %269 = vst.msk [vmem:[#allocation2 + $0x78] sm:$0xff] %vm35_vm0, %v220_v9  ;;  %v296_v20 = vld [vmem:[#allocation2 + $0x60] sm:$0xff]  ;;  %1079 = vmatpush.msrb.mxu2 %v867_v0  ;;  %997 = vmatpush.msrb.mxu3 %v898_v8  ;;  %v861_v9 = vld [vmem:[%s2495_s3 + $0x68] sm:$0xff] }
  0x98   :  { %279 = vst.msk [vmem:[#allocation2 + $0xc8] sm:$0xff] %vm35_vm0, %v230_v26  ;;  %959 = vmatpush.msrb.mxu1 %v860_v7  ;;  %v912_v0 = vld [vmem:[%s2495_s3 + $0x200] sm:$0xff] }
  0x99   :  { %1080 = vmatpush.msrb.mxu2 %v865_v4 }
  0x9b   :  { %1081 = vmatpush.msrb.mxu2 %v863_v6 }
  0x9c   :  { %v222_v13 = vpop.permute.xlu0 %221  ;;  %v125_v14 = vpop.permute.xlu1 %124 }
  0x9d   :  { %433 = vmatmul.f32.gmra.mxu0 %v292_v11  ;;  %563 = vmatmul.f32.gmra.mxu2 %v292_v11  ;;  %270 = vst.msk [vmem:[#allocation2 + $0x80] sm:$0xff] %vm253_vm3, %v222_v13  ;;  %v298_v27 = vld [vmem:[#allocation2 + $0x70] sm:$0xff]  ;;  %v135_v37 = vpop.permute.xlu2 %134 }
  0x9e   :  { %1436 = vmatmul.msk.f32.gmra.mxu1 %vm35_vm0, %v293_v12  ;;  %1452 = vmatmul.msk.f32.gmra.mxu3 %vm35_vm0, %v293_v12  ;;  %271 = vst.msk [vmem:[#allocation2 + $0x88] sm:$0xff] %vm35_vm0, %v222_v13  ;;  %v299_v28 = vld [vmem:[#allocation2 + $0x78] sm:$0xff]  ;;  %v896_v12 = vld [vmem:[%s2495_s3 + $0x180] sm:$0xff] }
  0x9f   :  { %165 = vst.msk [vmem:[#allocation2 + $0x90] sm:$0xff] %vm156_vm2, %v125_v14  ;;  %v309_v59 = vld [vmem:[#allocation2 + $0xc8] sm:$0xff]  ;;  %1082 = vmatpush.msrb.mxu2 %v861_v9  ;;  %v859_v14 = vld [vmem:[%s2495_s3 + $0x58] sm:$0xff]  ;;  %998 = vmatpush.msrb.mxu3 %v896_v12 }
  0xa0   :  { %272 = vst.msk [vmem:[#allocation2 + $0x90] sm:$0xff] %vm253_vm3, %v224_v10  ;;  %v858_v10 = vld [vmem:[%s2495_s3 + $0x50] sm:$0xff] }
  0xa1   :  { %170 = vst.msk [vmem:[#allocation2 + $0xe0] sm:$0xff] %vm156_vm2, %v135_v37  ;;  %960 = vmatpush.msrb.mxu1 %v858_v10  ;;  %1083 = vmatpush.msrb.mxu2 %v859_v14  ;;  %v849_v37 = vld [vmem:[%s2495_s3 + $0x8] sm:$0xff] }
  0xa4   :  { %v127_v17 = vpop.permute.xlu0 %126  ;;  %v226_v18 = vpop.permute.xlu1 %225  ;;  %v300_v33 = vld [vmem:[#allocation2 + $0x80] sm:$0xff] }
  0xa5   :  { %436 = vmatmul.f32.gmra.mxu0 %v294_v15  ;;  %566 = vmatmul.f32.gmra.mxu2 %v294_v15  ;;  %166 = vst.msk [vmem:[#allocation2 + $0xa0] sm:$0xff] %vm156_vm2, %v127_v17  ;;  %v301_v34 = vld [vmem:[#allocation2 + $0x88] sm:$0xff]  ;;  %v236_v44 = vpop.permute.xlu2 %235  ;;  %v856_v15 = vld [vmem:[%s2495_s3 + $0x40] sm:$0xff]  ;;  %v942_v17 = vld [vmem:[%s2495_s3 + $0x2f0] sm:$0xff] }
  0xa6   :  { %1437 = vmatmul.msk.f32.gmra.mxu1 %vm35_vm0, %v295_v16  ;;  %1453 = vmatmul.msk.f32.gmra.mxu3 %vm35_vm0, %v295_v16  ;;  %274 = vst.msk [vmem:[#allocation2 + $0xa0] sm:$0xff] %vm253_vm3, %v226_v18  ;;  %v894_v16 = vld [vmem:[%s2495_s3 + $0x170] sm:$0xff] }
  0xa7   :  { %275 = vst.msk [vmem:[#allocation2 + $0xa8] sm:$0xff] %vm35_vm0, %v226_v18  ;;  %v302_v39 = vld [vmem:[#allocation2 + $0x90] sm:$0xff]  ;;  %v857_v18 = vld [vmem:[%s2495_s3 + $0x48] sm:$0xff]  ;;  %961 = vmatpush.msrb.mxu1 %v856_v15  ;;  %999 = vmatpush.msrb.mxu3 %v894_v16 }
  0xa8   :  { %285 = vst.msk [vmem:[#allocation2 + $0xf8] sm:$0xff] %vm35_vm0, %v236_v44  ;;  %1032 = vmatpush.msrb.mxu0 %v942_v17  ;;  %1084 = vmatpush.msrb.mxu2 %v857_v18 }
  0xa9   :  { %962 = vmatpush.msrb.mxu1 %v854_v19 }
  0xab   :  { %963 = vmatpush.msrb.mxu1 %v852_v23 }
  0xac   :  { %v228_v22 = vpop.permute.xlu0 %227  ;;  %v131_v24 = vpop.permute.xlu1 %130 }
  0xad   :  { %439 = vmatmul.f32.gmra.mxu0 %v296_v20  ;;  %569 = vmatmul.f32.gmra.mxu2 %v296_v20  ;;  %276 = vst.msk [vmem:[#allocation2 + $0xb0] sm:$0xff] %vm253_vm3, %v228_v22  ;;  %v304_v45 = vld [vmem:[#allocation2 + $0xa0] sm:$0xff] }
  0xae   :  { %1438 = vmatmul.msk.f32.gmra.mxu1 %vm35_vm0, %v297_v21  ;;  %1454 = vmatmul.msk.f32.gmra.mxu3 %vm35_vm0, %v297_v21  ;;  %277 = vst.msk [vmem:[#allocation2 + $0xb8] sm:$0xff] %vm35_vm0, %v228_v22  ;;  %v305_v46 = vld [vmem:[#allocation2 + $0xa8] sm:$0xff]  ;;  %v892_v20 = vld [vmem:[%s2495_s3 + $0x160] sm:$0xff]  ;;  %v855_v22 = vld [vmem:[%s2495_s3 + $0x38] sm:$0xff] }
  0xaf   :  { %168 = vst.msk [vmem:[#allocation2 + $0xc0] sm:$0xff] %vm156_vm2, %v131_v24  ;;  %v940_v21 = vld [vmem:[%s2495_s3 + $0x2e0] sm:$0xff]  ;;  %v890_v24 = vld [vmem:[%s2495_s3 + $0x150] sm:$0xff]  ;;  %1000 = vmatpush.msrb.mxu3 %v892_v20  ;;  %1085 = vmatpush.msrb.mxu2 %v855_v22 }
  0xb0   :  { %278 = vst.msk [vmem:[#allocation2 + $0xc0] sm:$0xff] %vm253_vm3, %v230_v26  ;;  %v938_v26 = vld [vmem:[%s2495_s3 + $0x2d0] sm:$0xff]  ;;  %1033 = vmatpush.msrb.mxu0 %v940_v21  ;;  %964 = vmatpush.msrb.mxu1 %v850_v30 }
  0xb1   :  { %1001 = vmatpush.msrb.mxu3 %v890_v24  ;;  %1086 = vmatpush.msrb.mxu2 %v853_v29 }
  0xb2   :  { %1034 = vmatpush.msrb.mxu0 %v938_v26 }
  0xb4   :  { %v133_v31 = vpop.permute.xlu0 %132  ;;  %v232_v32 = vpop.permute.xlu1 %231  ;;  %v306_v51 = vld [vmem:[#allocation2 + $0xb0] sm:$0xff] }
  0xb5   :  { %442 = vmatmul.f32.gmra.mxu0 %v298_v27  ;;  %572 = vmatmul.f32.gmra.mxu2 %v298_v27  ;;  %169 = vst.msk [vmem:[#allocation2 + $0xd0] sm:$0xff] %vm156_vm2, %v133_v31  ;;  %v307_v52 = vld [vmem:[#allocation2 + $0xb8] sm:$0xff]  ;;  %v888_v31 = vld [vmem:[%s2495_s3 + $0x140] sm:$0xff] }
  0xb6   :  { %1439 = vmatmul.msk.f32.gmra.mxu1 %vm35_vm0, %v299_v28  ;;  %1455 = vmatmul.msk.f32.gmra.mxu3 %vm35_vm0, %v299_v28  ;;  %280 = vst.msk [vmem:[#allocation2 + $0xd0] sm:$0xff] %vm253_vm3, %v232_v32  ;;  %v315_v28 = vld [vmem:[#allocation2 + $0xf8] sm:$0xff] }
  0xb7   :  { %281 = vst.msk [vmem:[#allocation2 + $0xd8] sm:$0xff] %vm35_vm0, %v232_v32  ;;  %v308_v58 = vld [vmem:[#allocation2 + $0xc0] sm:$0xff]  ;;  %1002 = vmatpush.msrb.mxu3 %v888_v31 }
  0xb8   :  { %v936_v32 = vld [vmem:[%s2495_s3 + $0x2c0] sm:$0xff] }
  0xb9   :  { %1035 = vmatpush.msrb.mxu0 %v936_v32  ;;  %1003 = vmatpush.msrb.mxu3 %v886_v35 }
  0xbb   :  { %1036 = vmatpush.msrb.mxu0 %v934_v36 }
  0xbc   :  { %v234_v38 = vpop.permute.xlu0 %233  ;;  %v137_v43 = vpop.permute.xlu1 %136 }
  0xbd   :  { %445 = vmatmul.f32.gmra.mxu0 %v300_v33  ;;  %575 = vmatmul.f32.gmra.mxu2 %v300_v33  ;;  %282 = vst.msk [vmem:[#allocation2 + $0xe0] sm:$0xff] %vm253_vm3, %v234_v38  ;;  %v310_v1 = vld [vmem:[#allocation2 + $0xd0] sm:$0xff]  ;;  %v851_v33 = vld [vmem:[%s2495_s3 + $0x18] sm:$0xff] }
  0xbe   :  { %1440 = vmatmul.msk.f32.gmra.mxu1 %vm35_vm0, %v301_v34  ;;  %1456 = vmatmul.msk.f32.gmra.mxu3 %vm35_vm0, %v301_v34  ;;  %283 = vst.msk [vmem:[#allocation2 + $0xe8] sm:$0xff] %vm35_vm0, %v234_v38  ;;  %v311_v3 = vld [vmem:[#allocation2 + $0xd8] sm:$0xff]  ;;  %v848_v34 = vld [vmem:[%s2495_s3] sm:$0xff] }
  0xbf   :  { %171 = vst.msk [vmem:[#allocation2 + $0xf0] sm:$0xff] %vm156_vm2, %v137_v43  ;;  %1087 = vmatpush.msrb.mxu2 %v851_v33  ;;  %965 = vmatpush.msrb.mxu1 %v848_v34  ;;  %v884_v38 = vld [vmem:[%s2495_s3 + $0x120] sm:$0xff]  ;;  %v930_v43 = vld [vmem:[%s2495_s3 + $0x290] sm:$0xff] }
  0xc0   :  { %284 = vst.msk [vmem:[#allocation2 + $0xf0] sm:$0xff] %vm253_vm3, %v236_v44  ;;  %1004 = vmatpush.msrb.mxu3 %v884_v38  ;;  %v880_v44 = vld [vmem:[%s2495_s3 + $0x100] sm:$0xff] }
  0xc1   :  { %1088 = vmatpush.msrb.mxu2 %v849_v37 }
  0xc2   :  { %1005 = vmatpush.msrb.mxu3 %v882_v42 }
  0xc4   :  { %v139_v50 = vpop.permute.xlu0 %138  ;;  %v312_v11 = vld [vmem:[#allocation2 + $0xe0] sm:$0xff]  ;;  %1006 = vmatpush.msrb.mxu3 %v880_v44 }
  0xc5   :  { %448 = vmatmul.f32.gmra.mxu0 %v302_v39  ;;  %578 = vmatmul.f32.gmra.mxu2 %v302_v39  ;;  %172 = vst.msk [vmem:[#allocation2 + $0x100] sm:$0xff] %vm156_vm2, %v139_v50  ;;  %v313_v13 = vld [vmem:[#allocation2 + $0xe8] sm:$0xff]  ;;  %v932_v39 = vld [vmem:[%s2495_s3 + $0x2a0] sm:$0xff]  ;;  %v922_v50 = vld [vmem:[%s2495_s3 + $0x250] sm:$0xff] }
  0xc6   :  { %1441 = vmatmul.msk.f32.gmra.mxu1 %vm35_vm0, %v303_v40  ;;  %1457 = vmatmul.msk.f32.gmra.mxu3 %vm35_vm0, %v303_v40 }
  0xc7   :  { %v314_v27 = vld [vmem:[#allocation2 + $0xf0] sm:$0xff]  ;;  %1037 = vmatpush.msrb.mxu0 %v932_v39 }
  0xc9   :  { %1038 = vmatpush.msrb.mxu0 %v930_v43 }
  0xcc   :  { %v316_v40 = vld [vmem:[#allocation2 + $0x100] sm:$0xff] }
  0xcd   :  { %451 = vmatmul.f32.gmra.mxu0 %v304_v45  ;;  %581 = vmatmul.f32.gmra.mxu2 %v304_v45  ;;  %v928_v45 = vld [vmem:[%s2495_s3 + $0x280] sm:$0xff] }
  0xce   :  { %1442 = vmatmul.msk.f32.gmra.mxu1 %vm35_vm0, %v305_v46  ;;  %1458 = vmatmul.msk.f32.gmra.mxu3 %vm35_vm0, %v305_v46  ;;  %v926_v46 = vld [vmem:[%s2495_s3 + $0x270] sm:$0xff] }
  0xcf   :  { %1039 = vmatpush.msrb.mxu0 %v928_v45 }
  0xd1   :  { %1040 = vmatpush.msrb.mxu0 %v926_v46 }
  0xd3   :  { %1041 = vmatpush.msrb.mxu0 %v924_v48 }
  0xd5   :  { %454 = vmatmul.f32.gmra.mxu0 %v306_v51  ;;  %584 = vmatmul.f32.gmra.mxu2 %v306_v51  ;;  %v354_v51 = vld [vmem:[%s2496_s2] sm:$0x3] }
  0xd6   :  { %1443 = vmatmul.msk.f32.gmra.mxu1 %vm35_vm0, %v307_v52  ;;  %1459 = vmatmul.msk.f32.gmra.mxu3 %vm35_vm0, %v307_v52  ;;  %v920_v52 = vld [vmem:[%s2495_s3 + $0x240] sm:$0xff]  ;;  %v2031_v53 = vperm.slane %v354_v51, 1  ;;  %v2036_v56 = vperm.slane %v354_v51, 0 }
  0xd7   :  { %1042 = vmatpush.msrb.mxu0 %v922_v50 }
  0xd9   :  { %1043 = vmatpush.msrb.mxu0 %v920_v52 }
  0xdb   :  { %1044 = vmatpush.msrb.mxu0 %v918_v55 }
  0xdd   :  { %457 = vmatmul.f32.gmra.mxu0 %v308_v58  ;;  %587 = vmatmul.f32.gmra.mxu2 %v308_v58 }
  0xde   :  { %1444 = vmatmul.msk.f32.gmra.mxu1 %vm35_vm0, %v309_v59  ;;  %1460 = vmatmul.msk.f32.gmra.mxu3 %vm35_vm0, %v309_v59 }
  0xe5   :  { %460 = vmatmul.f32.gmra.mxu0 %v310_v1  ;;  %590 = vmatmul.f32.gmra.mxu2 %v310_v1 }
  0xe6   :  { %1445 = vmatmul.msk.f32.gmra.mxu1 %vm35_vm0, %v311_v3  ;;  %1461 = vmatmul.msk.f32.gmra.mxu3 %vm35_vm0, %v311_v3 }
  0xed   :  { %463 = vmatmul.f32.gmra.mxu0 %v312_v11  ;;  %593 = vmatmul.f32.gmra.mxu2 %v312_v11 }
  0xee   :  { %1446 = vmatmul.msk.f32.gmra.mxu1 %vm35_vm0, %v313_v13  ;;  %1462 = vmatmul.msk.f32.gmra.mxu3 %vm35_vm0, %v313_v13 }
  0xf5   :  { %466 = vmatmul.f32.gmra.mxu0 %v314_v27  ;;  %596 = vmatmul.f32.gmra.mxu2 %v314_v27 }
  0xf6   :  { %1447 = vmatmul.msk.f32.gmra.mxu1 %vm35_vm0, %v315_v28  ;;  %1463 = vmatmul.msk.f32.gmra.mxu3 %vm35_vm0, %v315_v28 }
  0xfd   :  { %469 = vmatmul.f32.gmra.mxu0 %v316_v40  ;;  %599 = vmatmul.f32.gmra.mxu2 %v316_v40 }
  0xfe   :  { %1448 = vmatmul.msk.f32.gmra.mxu1 %vm35_vm0, %v317_v41  ;;  %1464 = vmatmul.msk.f32.gmra.mxu3 %vm35_vm0, %v317_v41 }
 0x102   :  { %v425_v47 = vpop.f32.mrf.mxu0 }
 0x103   :  { %v490_v49 = vpop.f32.mrf.mxu1  ;;  %v426_v62 = vadd.f32 %v425_v47, %v2036_v56 }
 0x105   :  { %1089 = vmatmul.f32.vlgmr.msrb.gmra.mxu2 %v1474_v25  ;;  %v491_v3 = vadd.f32 %v490_v49, %v426_v62 }
 0x106   :  { %966 = vmatmul.f32.vlgmr.msrb.gmra.mxu1 %v1474_v25  ;;  %v916_v25 = vld [vmem:[%s2495_s3 + $0x220] sm:$0xff] }
 0x107   :  { %1045 = vmatpush.msrb.mxu0 %v916_v25  ;;  %v668_v11 = vmax.f32 %v491_v3, 0.0  ;;  %v943_v3 = vld [vmem:[%s2495_s3 + $0x2f8] sm:$0xff] }
 0x108   :  { %v555_v54 = vpop.f32.mrf.mxu2  ;;  %1155 = vmatpush.msra.mxu3 %v943_v3 }
 0x109   :  { %v620_v57 = vpop.f32.mrf.mxu3  ;;  %v556_v59 = vadd.f32 %v555_v54, %v2031_v53  ;;  %1046 = vmatpush.msrb.mxu0 %v914_v61 }
 0x10a   :  { %v428_v58 = vpop.f32.mrf.mxu0 }
 0x10b   :  { %v493_v60 = vpop.f32.mrf.mxu1  ;;  %v429_v63 = vadd.f32 %v428_v58, %v2036_v56  ;;  %v621_v1 = vadd.f32 %v620_v57, %v556_v59  ;;  %1047 = vmatpush.msrb.mxu0 %v912_v0 }
 0x10d   :  { %v494_v4 = vadd.f32 %v493_v60, %v429_v63  ;;  %v669_v8 = vmax.f32 %v621_v1, 0.0 }
 0x10f   :  { %v670_v12 = vmax.f32 %v494_v4, 0.0  ;;  %v746_v14 = vmax.f32 %v668_v11, %v669_v8  ;;  %v911_v4 = vld [vmem:[%s2495_s3 + $0x1f8] sm:$0xff] }
 0x110   :  { %v558_v2 = vpop.f32.mrf.mxu2  ;;  %1114 = vmatpush.msra.mxu1 %v911_v4 }
 0x111   :  { %v559_v5 = vadd.f32 %v558_v2, %v2031_v53  ;;  %v623_v6 = vpop.f32.mrf.mxu3 }
 0x112   :  { %v431_v7 = vpop.f32.mrf.mxu0 }
 0x113   :  { %v624_v9 = vadd.f32 %v623_v6, %v559_v5  ;;  %v496_v10 = vpop.f32.mrf.mxu1  ;;  %v432_v22 = vadd.f32 %v431_v7, %v2036_v56  ;;  %v941_v6 = vld [vmem:[%s2495_s3 + $0x2e8] sm:$0xff] }
 0x114   :  { %1156 = vmatpush.msra.mxu3 %v941_v6  ;;  %v891_v6 = vld [vmem:[%s2495_s3 + $0x158] sm:$0xff] }
 0x115   :  { %v671_v13 = vmax.f32 %v624_v9, 0.0  ;;  %v497_v27 = vadd.f32 %v496_v10, %v432_v22 }
 0x117   :  { %v749_v15 = vmax.f32 %v670_v12, %v671_v13  ;;  %v672_v35 = vmax.f32 %v497_v27, 0.0  ;;  %v909_v12 = vld [vmem:[%s2495_s3 + $0x1e8] sm:$0xff]  ;;  %v939_v13 = vld [vmem:[%s2495_s3 + $0x2d8] sm:$0xff] }
 0x118   :  { %v561_v16 = vpop.f32.mrf.mxu2  ;;  %1115 = vmatpush.msra.mxu1 %v909_v12  ;;  %1157 = vmatpush.msra.mxu3 %v939_v13  ;;  %v889_v12 = vld [vmem:[%s2495_s3 + $0x148] sm:$0xff] }
 0x119   :  { %v2051_v17 = vmax.f32 %v746_v14, %v749_v15  ;;  %v626_v18 = vpop.f32.mrf.mxu3  ;;  %v562_v20 = vadd.f32 %v561_v16, %v2031_v53  ;;  %v907_v14 = vld [vmem:[%s2495_s3 + $0x1d8] sm:$0xff]  ;;  %v937_v16 = vld [vmem:[%s2495_s3 + $0x2c8] sm:$0xff] }
 0x11a   :  { %v434_v19 = vpop.f32.mrf.mxu0  ;;  %1116 = vmatpush.msra.mxu1 %v907_v14  ;;  %1158 = vmatpush.msra.mxu3 %v937_v16 }
 0x11b   :  { %v499_v21 = vpop.f32.mrf.mxu1  ;;  %969 = vmatmul.f32.gmra.mxu1 %v2051_v17  ;;  %1007 = vmatmul.f32.vlgmr.msrb.gmra.mxu3 %v2051_v17  ;;  %v435_v23 = vadd.f32 %v434_v19, %v2036_v56  ;;  %v627_v24 = vadd.f32 %v626_v18, %v562_v20 }
 0x11c   :  { %1092 = vmatmul.f32.gmra.mxu2 %v2051_v17 }
 0x11d   :  { %v500_v28 = vadd.f32 %v499_v21, %v435_v23  ;;  %v673_v32 = vmax.f32 %v627_v24, 0.0 }
 0x11f   :  { %v674_v36 = vmax.f32 %v500_v28, 0.0  ;;  %v756_v38 = vmax.f32 %v672_v35, %v673_v32  ;;  %v905_v35 = vld [vmem:[%s2495_s3 + $0x1c8] sm:$0xff] }
 0x120   :  { %v564_v26 = vpop.f32.mrf.mxu2  ;;  %1117 = vmatpush.msra.mxu1 %v905_v35 }
 0x121   :  { %v565_v29 = vadd.f32 %v564_v26, %v2031_v53  ;;  %v629_v30 = vpop.f32.mrf.mxu3 }
 0x122   :  { %v437_v31 = vpop.f32.mrf.mxu0 }
 0x123   :  { %v630_v33 = vadd.f32 %v629_v30, %v565_v29  ;;  %v502_v34 = vpop.f32.mrf.mxu1  ;;  %v438_v46 = vadd.f32 %v437_v31, %v2036_v56 }
 0x125   :  { %v675_v37 = vmax.f32 %v630_v33, 0.0  ;;  %v503_v50 = vadd.f32 %v502_v34, %v438_v46 }
 0x127   :  { %v759_v39 = vmax.f32 %v674_v36, %v675_v37  ;;  %v676_v59 = vmax.f32 %v503_v50, 0.0  ;;  %v935_v36 = vld [vmem:[%s2495_s3 + $0x2b8] sm:$0xff] }
 0x128   :  { %v567_v40 = vpop.f32.mrf.mxu2  ;;  %1159 = vmatpush.msra.mxu3 %v935_v36 }
 0x129   :  { %v2060_v41 = vmax.f32 %v756_v38, %v759_v39  ;;  %v632_v42 = vpop.f32.mrf.mxu3  ;;  %v568_v44 = vadd.f32 %v567_v40, %v2031_v53  ;;  %v903_v38 = vld [vmem:[%s2495_s3 + $0x1b8] sm:$0xff]  ;;  %v933_v39 = vld [vmem:[%s2495_s3 + $0x2a8] sm:$0xff] }
 0x12a   :  { %v440_v43 = vpop.f32.mrf.mxu0  ;;  %1118 = vmatpush.msra.mxu1 %v903_v38  ;;  %1160 = vmatpush.msra.mxu3 %v933_v39 }
 0x12b   :  { %v505_v45 = vpop.f32.mrf.mxu1  ;;  %972 = vmatmul.f32.gmra.mxu1 %v2060_v41  ;;  %1010 = vmatmul.f32.gmra.mxu3 %v2060_v41  ;;  %v441_v47 = vadd.f32 %v440_v43, %v2036_v56  ;;  %v633_v48 = vadd.f32 %v632_v42, %v568_v44 }
 0x12c   :  { %1048 = vmatmul.f32.vlgmr.msrb.gmra.mxu0 %v2060_v41  ;;  %1095 = vmatmul.f32.gmra.mxu2 %v2060_v41 }
 0x12d   :  { %v506_v51 = vadd.f32 %v505_v45, %v441_v47  ;;  %v677_v57 = vmax.f32 %v633_v48, 0.0  ;;  %v901_v45 = vld [vmem:[%s2495_s3 + $0x1a8] sm:$0xff]  ;;  %v931_v47 = vld [vmem:[%s2495_s3 + $0x298] sm:$0xff] }
 0x12e   :  { %1119 = vmatpush.msra.mxu1 %v901_v45  ;;  %v899_v48 = vld [vmem:[%s2495_s3 + $0x198] sm:$0xff]  ;;  %1161 = vmatpush.msra.mxu3 %v931_v47  ;;  %v917_v47 = vld [vmem:[%s2495_s3 + $0x228] sm:$0xff] }
 0x12f   :  { %v678_v60 = vmax.f32 %v506_v51, 0.0  ;;  %v766_v62 = vmax.f32 %v676_v59, %v677_v57  ;;  %v919_v45 = vld [vmem:[%s2495_s3 + $0x238] sm:$0xff] }
 0x130   :  { %v570_v49 = vpop.f32.mrf.mxu2  ;;  %1120 = vmatpush.msra.mxu1 %v899_v48 }
 0x131   :  { %v571_v52 = vadd.f32 %v570_v49, %v2031_v53  ;;  %v635_v54 = vpop.f32.mrf.mxu3  ;;  %v929_v49 = vld [vmem:[%s2495_s3 + $0x288] sm:$0xff] }
 0x132   :  { %v443_v55 = vpop.f32.mrf.mxu0  ;;  %1162 = vmatpush.msra.mxu3 %v929_v49 }
 0x133   :  { %v636_v58 = vadd.f32 %v635_v54, %v571_v52  ;;  %v508_v25 = vpop.f32.mrf.mxu1  ;;  %v444_v9 = vadd.f32 %v443_v55, %v2036_v56 }
 0x135   :  { %v679_v61 = vmax.f32 %v636_v58, 0.0  ;;  %v509_v18 = vadd.f32 %v508_v25, %v444_v9  ;;  %v897_v58 = vld [vmem:[%s2495_s3 + $0x188] sm:$0xff]  ;;  %v927_v9 = vld [vmem:[%s2495_s3 + $0x278] sm:$0xff] }
 0x136   :  { %1121 = vmatpush.msra.mxu1 %v897_v58  ;;  %1163 = vmatpush.msra.mxu3 %v927_v9 }
 0x137   :  { %v769_v63 = vmax.f32 %v678_v60, %v679_v61  ;;  %v680_v27 = vmax.f32 %v509_v18, 0.0  ;;  %v895_v61 = vld [vmem:[%s2495_s3 + $0x178] sm:$0xff] }
 0x138   :  { %v573_v0 = vpop.f32.mrf.mxu2  ;;  %1122 = vmatpush.msra.mxu1 %v895_v61 }
 0x139   :  { %v2070_v1 = vmax.f32 %v766_v62, %v769_v63  ;;  %v638_v2 = vpop.f32.mrf.mxu3  ;;  %v574_v7 = vadd.f32 %v573_v0, %v2031_v53 }
 0x13a   :  { %v446_v5 = vpop.f32.mrf.mxu0 }
 0x13b   :  { %v511_v8 = vpop.f32.mrf.mxu1  ;;  %975 = vmatmul.f32.gmra.mxu1 %v2070_v1  ;;  %1013 = vmatmul.f32.gmra.mxu3 %v2070_v1  ;;  %v447_v10 = vadd.f32 %v446_v5, %v2036_v56  ;;  %v639_v11 = vadd.f32 %v638_v2, %v574_v7  ;;  %v893_v2 = vld [vmem:[%s2495_s3 + $0x168] sm:$0xff] }
 0x13c   :  { %1051 = vmatmul.f32.gmra.mxu0 %v2070_v1  ;;  %1098 = vmatmul.f32.gmra.mxu2 %v2070_v1 }
 0x13d   :  { %v512_v19 = vadd.f32 %v511_v8, %v447_v10  ;;  %v681_v23 = vmax.f32 %v639_v11, 0.0  ;;  %1123 = vmatpush.msra.mxu1 %v893_v2  ;;  %v925_v11 = vld [vmem:[%s2495_s3 + $0x268] sm:$0xff] }
 0x13e   :  { %1164 = vmatpush.msra.mxu3 %v925_v11 }
 0x13f   :  { %v682_v28 = vmax.f32 %v512_v19, 0.0  ;;  %v776_v30 = vmax.f32 %v680_v27, %v681_v23  ;;  %1124 = vmatpush.msra.mxu1 %v891_v6  ;;  %v885_v19 = vld [vmem:[%s2495_s3 + $0x128] sm:$0xff] }
 0x140   :  { %v576_v15 = vpop.f32.mrf.mxu2 }
 0x141   :  { %v577_v20 = vadd.f32 %v576_v15, %v2031_v53  ;;  %v641_v21 = vpop.f32.mrf.mxu3  ;;  %v887_v15 = vld [vmem:[%s2495_s3 + $0x138] sm:$0xff]  ;;  %1125 = vmatpush.msra.mxu1 %v889_v12 }
 0x142   :  { %v449_v22 = vpop.f32.mrf.mxu0 }
 0x143   :  { %v642_v24 = vadd.f32 %v641_v21, %v577_v20  ;;  %v514_v26 = vpop.f32.mrf.mxu1  ;;  %v450_v43 = vadd.f32 %v449_v22, %v2036_v56  ;;  %v923_v21 = vld [vmem:[%s2495_s3 + $0x258] sm:$0xff]  ;;  %1126 = vmatpush.msra.mxu1 %v887_v15  ;;  %v921_v22 = vld [vmem:[%s2495_s3 + $0x248] sm:$0xff] }
 0x144   :  { %1165 = vmatpush.msra.mxu3 %v923_v21 }
 0x145   :  { %v683_v29 = vmax.f32 %v642_v24, 0.0  ;;  %v515_v51 = vadd.f32 %v514_v26, %v450_v43  ;;  %v883_v24 = vld [vmem:[%s2495_s3 + $0x118] sm:$0xff]  ;;  %1127 = vmatpush.msra.mxu1 %v885_v19 }
 0x146   :  { %1166 = vmatpush.msra.mxu3 %v921_v22 }
 0x147   :  { %v779_v31 = vmax.f32 %v682_v28, %v683_v29  ;;  %v684_v62 = vmax.f32 %v515_v51, 0.0  ;;  %1128 = vmatpush.msra.mxu1 %v883_v24 }
 0x148   :  { %v579_v32 = vpop.f32.mrf.mxu2  ;;  %1167 = vmatpush.msra.mxu3 %v919_v45 }
 0x149   :  { %v2101_v33 = vmax.f32 %v776_v30, %v779_v31  ;;  %v644_v34 = vpop.f32.mrf.mxu3  ;;  %v580_v40 = vadd.f32 %v579_v32, %v2031_v53  ;;  %v881_v31 = vld [vmem:[%s2495_s3 + $0x108] sm:$0xff] }
 0x14a   :  { %v452_v37 = vpop.f32.mrf.mxu0  ;;  %1129 = vmatpush.msra.mxu1 %v881_v31  ;;  %1168 = vmatpush.msra.mxu3 %v917_v47 }
 0x14b   :  { %v517_v42 = vpop.f32.mrf.mxu1  ;;  %978 = vmatmul.f32.gmra.mxu1 %v2101_v33  ;;  %1016 = vmatmul.f32.gmra.mxu3 %v2101_v33  ;;  %v453_v44 = vadd.f32 %v452_v37, %v2036_v56  ;;  %v645_v46 = vadd.f32 %v644_v34, %v580_v40 }
 0x14c   :  { %1054 = vmatmul.f32.gmra.mxu0 %v2101_v33  ;;  %1101 = vmatmul.f32.gmra.mxu2 %v2101_v33 }
 0x14d   :  { %v518_v52 = vadd.f32 %v517_v42, %v453_v44  ;;  %v685_v25 = vmax.f32 %v645_v46, 0.0 }
 0x14f   :  { %v686_v63 = vmax.f32 %v518_v52, 0.0  ;;  %v786_v3 = vmax.f32 %v684_v62, %v685_v25 }
 0x150   :  { %v582_v50 = vpop.f32.mrf.mxu2 }
 0x151   :  { %v583_v54 = vadd.f32 %v582_v50, %v2031_v53  ;;  %v647_v55 = vpop.f32.mrf.mxu3  ;;  %v915_v50 = vld [vmem:[%s2495_s3 + $0x218] sm:$0xff] }
 0x152   :  { %v455_v57 = vpop.f32.mrf.mxu0  ;;  %1169 = vmatpush.msra.mxu3 %v915_v50  ;;  %v1276_v50 = vld [vmem:[%s2499_s5 + $0x60] sm:$0xff] }
 0x153   :  { %v648_v59 = vadd.f32 %v647_v55, %v583_v54  ;;  %v520_v60 = vpop.f32.mrf.mxu1  ;;  %v456_v16 = vadd.f32 %v455_v57, %v2036_v56  ;;  %v913_v54 = vld [vmem:[%s2495_s3 + $0x208] sm:$0xff] }
 0x154   :  { %1170 = vmatpush.msra.mxu3 %v913_v54 }
 0x155   :  { %v687_v0 = vmax.f32 %v648_v59, 0.0  ;;  %v521_v26 = vadd.f32 %v520_v60, %v456_v16 }
 0x157   :  { %v789_v4 = vmax.f32 %v686_v63, %v687_v0  ;;  %v688_v36 = vmax.f32 %v521_v26, 0.0 }
 0x158   :  { %v585_v5 = vpop.f32.mrf.mxu2 }
 0x159   :  { %v2147_v7 = vmax.f32 %v786_v3, %v789_v4  ;;  %v650_v8 = vpop.f32.mrf.mxu3  ;;  %v586_v13 = vadd.f32 %v585_v5, %v2031_v53 }
 0x15a   :  { %v458_v10 = vpop.f32.mrf.mxu0 }
 0x15b   :  { %v523_v14 = vpop.f32.mrf.mxu1  ;;  %981 = vmatmul.f32.gmra.mxu1 %v2147_v7  ;;  %1019 = vmatmul.f32.gmra.mxu3 %v2147_v7  ;;  %v459_v18 = vadd.f32 %v458_v10, %v2036_v56  ;;  %v651_v20 = vadd.f32 %v650_v8, %v586_v13 }
 0x15c   :  { %1057 = vmatmul.f32.gmra.mxu0 %v2147_v7  ;;  %1104 = vmatmul.f32.gmra.mxu2 %v2147_v7 }
 0x15d   :  { %v524_v27 = vadd.f32 %v523_v14, %v459_v18  ;;  %v689_v32 = vmax.f32 %v651_v20, 0.0 }
 0x15f   :  { %v690_v37 = vmax.f32 %v524_v27, 0.0  ;;  %v796_v39 = vmax.f32 %v688_v36, %v689_v32 }
 0x160   :  { %v588_v23 = vpop.f32.mrf.mxu2 }
 0x161   :  { %v589_v28 = vadd.f32 %v588_v23, %v2031_v53  ;;  %v653_v29 = vpop.f32.mrf.mxu3 }
 0x162   :  { %v461_v30 = vpop.f32.mrf.mxu0 }
 0x163   :  { %v654_v34 = vadd.f32 %v653_v29, %v589_v28  ;;  %v526_v35 = vpop.f32.mrf.mxu1  ;;  %v462_v51 = vadd.f32 %v461_v30, %v2036_v56 }
 0x165   :  { %v691_v38 = vmax.f32 %v654_v34, 0.0  ;;  %v527_v58 = vadd.f32 %v526_v35, %v462_v51  ;;  %v1295_v51 = vld [vmem:[%s2499_s5 + $0xf8] sm:$0xff] }
 0x166   :  { %1352 = vmatpush.msra.mxu2 %v1295_v51 }
 0x167   :  { %v799_v40 = vmax.f32 %v690_v37, %v691_v38  ;;  %v692_v0 = vmax.f32 %v527_v58, 0.0  ;;  %v1273_v58 = vld [vmem:[%s2499_s5 + $0x48] sm:$0xff] }
 0x168   :  { %v591_v42 = vpop.f32.mrf.mxu2 }
 0x169   :  { %v2184_v43 = vmax.f32 %v796_v39, %v799_v40  ;;  %v656_v44 = vpop.f32.mrf.mxu3  ;;  %v592_v48 = vadd.f32 %v591_v42, %v2031_v53 }
 0x16a   :  { %v464_v46 = vpop.f32.mrf.mxu0 }
 0x16b   :  { %984 = vmatmul.f32.gmra.mxu1 %v2184_v43  ;;  %1022 = vmatmul.f32.gmra.mxu3 %v2184_v43  ;;  %v529_v49 = vpop.f32.mrf.mxu1  ;;  %v465_v52 = vadd.f32 %v464_v46, %v2036_v56  ;;  %v657_v55 = vadd.f32 %v656_v44, %v592_v48  ;;  %v1279_v46 = vld [vmem:[%s2499_s5 + $0x78] sm:$0xff]  ;;  %v1278_v48 = vld [vmem:[%s2499_s5 + $0x70] sm:$0xff] }
 0x16c   :  { %1060 = vmatmul.f32.gmra.mxu0 %v2184_v43  ;;  %1107 = vmatmul.f32.gmra.mxu2 %v2184_v43 }
 0x16d   :  { %v530_v25 = vadd.f32 %v529_v49, %v465_v52  ;;  %v693_v62 = vmax.f32 %v657_v55, 0.0  ;;  %1332 = vmatpush.msra.mxu0 %v1279_v46  ;;  %v1277_v49 = vld [vmem:[%s2499_s5 + $0x68] sm:$0xff]  ;;  %v1275_v52 = vld [vmem:[%s2499_s5 + $0x58] sm:$0xff]  ;;  %v1274_v55 = vld [vmem:[%s2499_s5 + $0x50] sm:$0xff] }
 0x16f   :  { %v694_v2 = vmax.f32 %v530_v25, 0.0  ;;  %v806_v5 = vmax.f32 %v692_v0, %v693_v62  ;;  %1333 = vmatpush.msra.mxu0 %v1278_v48  ;;  %v1270_v62 = vld [vmem:[%s2499_s5 + $0x30] sm:$0xff]  ;;  %v1292_v0 = vld [vmem:[%s2499_s5 + $0xe0] sm:$0xff] }
 0x170   :  { %v594_v57 = vpop.f32.mrf.mxu2 }
 0x171   :  { %v595_v59 = vadd.f32 %v594_v57, %v2031_v53  ;;  %v659_v60 = vpop.f32.mrf.mxu3  ;;  %1334 = vmatpush.msra.mxu0 %v1277_v49  ;;  %v1294_v57 = vld [vmem:[%s2499_s5 + $0xf0] sm:$0xff]  ;;  %v1303_v49 = vld [vmem:[%s2499_s5 + $0x138] sm:$0xff] }
 0x172   :  { %v467_v61 = vpop.f32.mrf.mxu0  ;;  %1353 = vmatpush.msra.mxu2 %v1294_v57 }
 0x173   :  { %v660_v63 = vadd.f32 %v659_v60, %v595_v59  ;;  %v532_v4 = vpop.f32.mrf.mxu1  ;;  %v468_v13 = vadd.f32 %v467_v61, %v2036_v56  ;;  %1335 = vmatpush.msra.mxu0 %v1276_v50  ;;  %v1272_v59 = vld [vmem:[%s2499_s5 + $0x40] sm:$0xff]  ;;  %v1271_v60 = vld [vmem:[%s2499_s5 + $0x38] sm:$0xff] }
 0x174   :  { %v1327_v50 = vld [vmem:[%s2499_s5 + $0x1f8] sm:$0xff] }
 0x175   :  { %v695_v3 = vmax.f32 %v660_v63, 0.0  ;;  %v533_v19 = vadd.f32 %v532_v4, %v468_v13  ;;  %1336 = vmatpush.msra.mxu0 %v1275_v52  ;;  %v1293_v63 = vld [vmem:[%s2499_s5 + $0xe8] sm:$0xff] }
 0x176   :  { %1354 = vmatpush.msra.mxu2 %v1293_v63  ;;  %v1265_v13 = vld [vmem:[%s2499_s5 + $0x8] sm:$0xff] }
 0x177   :  { %v809_v6 = vmax.f32 %v694_v2, %v695_v3  ;;  %v696_v26 = vmax.f32 %v533_v19, 0.0  ;;  %1337 = vmatpush.msra.mxu0 %v1274_v55  ;;  %v1269_v2 = vld [vmem:[%s2499_s5 + $0x28] sm:$0xff]  ;;  %v1311_v19 = vld [vmem:[%s2499_s5 + $0x178] sm:$0xff]  ;;  %v1326_v55 = vld [vmem:[%s2499_s5 + $0x1f0] sm:$0xff] }
 0x178   :  { %v597_v8 = vpop.f32.mrf.mxu2  ;;  %1355 = vmatpush.msra.mxu2 %v1292_v0 }
 0x179   :  { %v810_v9 = vmax.f32 %v806_v5, %v809_v6  ;;  %v662_v10 = vpop.f32.mrf.mxu3  ;;  %v598_v12 = vadd.f32 %v597_v8, %v2031_v53  ;;  %1338 = vmatpush.msra.mxu0 %v1273_v58  ;;  %v1268_v5 = vld [vmem:[%s2499_s5 + $0x20] sm:$0xff]  ;;  %v1291_v8 = vld [vmem:[%s2499_s5 + $0xd8] sm:$0xff] }
 0x17a   :  { %v470_v11 = vpop.f32.mrf.mxu0  ;;  %1356 = vmatpush.msra.mxu2 %v1291_v8 }
 0x17b   :  { %987 = vmatmul.f32.gmra.mxu1 %v810_v9  ;;  %1025 = vmatmul.f32.gmra.mxu3 %v810_v9  ;;  %v471_v14 = vadd.f32 %v470_v11, %v2036_v56  ;;  %v535_v15 = vpop.f32.mrf.mxu1  ;;  %v663_v16 = vadd.f32 %v662_v10, %v598_v12  ;;  %v1471_v56 = vld [vmem:[#allocation2] sm:$0xff]  ;;  %v1266_v10 = vld [vmem:[%s2499_s5 + $0x10] sm:$0xff] }
 0x17c   :  { %1063 = vmatmul.f32.gmra.mxu0 %v810_v9  ;;  %1110 = vmatmul.f32.gmra.mxu2 %v810_v9  ;;  %v1290_v11 = vld [vmem:[%s2499_s5 + $0xd0] sm:$0xff] }
 0x17d   :  { %v536_v20 = vadd.f32 %v535_v15, %v471_v14  ;;  %v697_v23 = vmax.f32 %v663_v16, 0.0  ;;  %1339 = vmatpush.msra.mxu0 %v1272_v59  ;;  %1357 = vmatpush.msra.mxu2 %v1290_v11  ;;  %v1289_v14 = vld [vmem:[%s2499_s5 + $0xc8] sm:$0xff]  ;;  %v1264_v15 = vld [vmem:[%s2499_s5] sm:$0xff] }
 0x17e   :  { %v1288_v16 = vld [vmem:[%s2499_s5 + $0xc0] sm:$0xff] }
 0x17f   :  { %v698_v27 = vmax.f32 %v536_v20, 0.0  ;;  %v816_v29 = vmax.f32 %v696_v26, %v697_v23  ;;  %1340 = vmatpush.msra.mxu0 %v1271_v60  ;;  %1358 = vmatpush.msra.mxu2 %v1289_v14  ;;  %v1286_v20 = vld [vmem:[%s2499_s5 + $0xb0] sm:$0xff]  ;;  %v1309_v23 = vld [vmem:[%s2499_s5 + $0x168] sm:$0xff] }
 0x180   :  { %v600_v18 = vpop.f32.mrf.mxu2  ;;  %v1325_v60 = vld [vmem:[%s2499_s5 + $0x1e8] sm:$0xff] }
 0x181   :  { %v601_v21 = vadd.f32 %v600_v18, %v2031_v53  ;;  %v665_v22 = vpop.f32.mrf.mxu3  ;;  %v2217_v53 = vld [vmem:[%s2497_s4] sm:$0x3]  ;;  %1341 = vmatpush.msra.mxu0 %v1270_v62  ;;  %1359 = vmatpush.msra.mxu2 %v1288_v16  ;;  %v1287_v18 = vld [vmem:[%s2499_s5 + $0xb8] sm:$0xff]  ;;  %v1322_v16 = vld [vmem:[%s2499_s5 + $0x1d0] sm:$0xff] }
 0x183   :  { %v666_v24 = vadd.f32 %v665_v22, %v601_v21  ;;  %1130 = vmatmul.f32.vlgmr.msra.gmra.mxu1 %v2051_v17  ;;  %v2220_v17 = vperm.slane %v2217_v53, 0  ;;  %v967_v32 = vpop.f32.mrf.mxu1  ;;  %1342 = vmatpush.msra.mxu0 %v1269_v2  ;;  %v1310_v21 = vld [vmem:[%s2499_s5 + $0x170] sm:$0xff]  ;;  %v1285_v22 = vld [vmem:[%s2499_s5 + $0xa8] sm:$0xff] }
 0x184   :  { %1360 = vmatpush.msra.mxu2 %v1287_v18 }
 0x185   :  { %v699_v28 = vmax.f32 %v666_v24, 0.0  ;;  %v968_v34 = vadd.f32 %v967_v32, %v2220_v17  ;;  %1343 = vmatpush.msra.mxu0 %v1268_v5  ;;  %v1282_v32 = vld [vmem:[%s2499_s5 + $0x90] sm:$0xff] }
 0x186   :  { %1361 = vmatpush.msra.mxu2 %v1286_v20  ;;  %v1297_v20 = vld [vmem:[%s2499_s5 + $0x108] sm:$0xff] }
 0x187   :  { %v819_v30 = vmax.f32 %v698_v27, %v699_v28  ;;  %v1284_v28 = vld [vmem:[%s2499_s5 + $0xa0] sm:$0xff] }
 0x188   :  { %v1090_v24 = vpop.f32.mrf.mxu2  ;;  %1362 = vmatpush.msra.mxu2 %v1285_v22 }
 0x189   :  { %v820_v31 = vmax.f32 %v816_v29, %v819_v30  ;;  %v1308_v29 = vld [vmem:[%s2499_s5 + $0x160] sm:$0xff] }
 0x18a   :  { %1363 = vmatpush.msra.mxu2 %v1284_v28 }
 0x18b   :  { %1028 = vmatmul.f32.gmra.mxu3 %v820_v31  ;;  %1066 = vmatmul.f32.gmra.mxu0 %v820_v31 }
 0x18c   :  { %1133 = vmatmul.f32.gmra.mxu1 %v2060_v41 }
 0x193   :  { %1069 = vmatmul.f32.gmra.mxu0 %v1471_v56  ;;  %1171 = vmatmul.f32.vlgmr.msra.gmra.mxu3 %v2060_v41 }
 0x194   :  { %1136 = vmatmul.f32.gmra.mxu1 %v2070_v1 }
 0x198   :  { %v2231_v41 = vpop.f32.mrf.mxu1 }
 0x199   :  { %v971_v51 = vadd.f32 %v2231_v41, %v2220_v17  ;;  %v1301_v41 = vld [vmem:[%s2499_s5 + $0x128] sm:$0xff] }
 0x19b   :  { %1174 = vmatmul.f32.gmra.mxu3 %v2070_v1 }
 0x19c   :  { %1139 = vmatmul.f32.gmra.mxu1 %v2101_v33 }
 0x19e   :  { %v1008_v35 = vpop.f32.mrf.mxu3 }
 0x19f   :  { %v2225_v36 = vadd.f32 %v1008_v35, %v968_v34  ;;  %v1306_v34 = vld [vmem:[%s2499_s5 + $0x150] sm:$0xff]  ;;  %v2366_v35 = vperm.slane %v2217_v53, 1  ;;  %v1280_v53 = vld [vmem:[%s2499_s5 + $0x80] sm:$0xff] }
 0x1a3   :  { %1177 = vmatmul.f32.gmra.mxu3 %v2101_v33 }
 0x1a4   :  { %1142 = vmatmul.f32.gmra.mxu1 %v2147_v7 }
 0x1a8   :  { %v973_v1 = vpop.f32.mrf.mxu1 }
 0x1a9   :  { %v974_v38 = vadd.f32 %v973_v1, %v2220_v17  ;;  %v1049_v30 = vpop.f32.mrf.mxu0  ;;  %v1281_v1 = vld [vmem:[%s2499_s5 + $0x88] sm:$0xff] }
 0x1aa   :  { %v1050_v62 = vadd.f32 %v1049_v30, %v2225_v36  ;;  %v1299_v36 = vld [vmem:[%s2499_s5 + $0x118] sm:$0xff] }
 0x1ab   :  { %1180 = vmatmul.f32.gmra.mxu3 %v2147_v7 }
 0x1ac   :  { %1145 = vmatmul.f32.gmra.mxu1 %v2184_v43  ;;  %v1196_v11 = vmax.f32 %v1050_v62, 0.0  ;;  %v1312_v62 = vld [vmem:[%s2499_s5 + $0x180] sm:$0xff] }
 0x1ae   :  { %v2234_v37 = vpop.f32.mrf.mxu3 }
 0x1af   :  { %v1012_v58 = vadd.f32 %v2234_v37, %v971_v51  ;;  %v1300_v37 = vld [vmem:[%s2499_s5 + $0x120] sm:$0xff] }
 0x1b3   :  { %1183 = vmatmul.f32.gmra.mxu3 %v2184_v43 }
 0x1b4   :  { %1148 = vmatmul.f32.gmra.mxu1 %v810_v9 }
 0x1b8   :  { %v2239_v7 = vpop.f32.mrf.mxu1 }
 0x1b9   :  { %v1052_v46 = vpop.f32.mrf.mxu0 }
 0x1ba   :  { %v1053_v63 = vadd.f32 %v1052_v46, %v1012_v58 }
 0x1bb   :  { %1186 = vmatmul.f32.gmra.mxu3 %v810_v9  ;;  %v1267_v9 = vld [vmem:[%s2499_s5 + $0x18] sm:$0xff] }
 0x1bc   :  { %1151 = vmatmul.f32.gmra.mxu1 %v820_v31  ;;  %1344 = vmatpush.msra.mxu0 %v1267_v9 }
 0x1be   :  { %v1014_v39 = vpop.f32.mrf.mxu3  ;;  %1345 = vmatpush.msra.mxu0 %v1266_v10  ;;  %v1323_v10 = vld [vmem:[%s2499_s5 + $0x1d8] sm:$0xff] }
 0x1bf   :  { %v2237_v33 = vadd.f32 %v1014_v39, %v974_v38  ;;  %v1305_v38 = vld [vmem:[%s2499_s5 + $0x148] sm:$0xff]  ;;  %v1091_v39 = vadd.f32 %v1090_v24, %v2366_v35  ;;  %v1296_v24 = vld [vmem:[%s2499_s5 + $0x100] sm:$0xff] }
 0x1c0   :  { %1346 = vmatpush.msra.mxu0 %v1265_v13 }
 0x1c2   :  { %1347 = vmatpush.msra.mxu0 %v1264_v15  ;;  %v1298_v15 = vld [vmem:[%s2499_s5 + $0x110] sm:$0xff] }
 0x1c3   :  { %1189 = vmatmul.f32.gmra.mxu3 %v820_v31  ;;  %v1283_v31 = vld [vmem:[%s2499_s5 + $0x98] sm:$0xff] }
 0x1c4   :  { %1372 = vmatpush.msrb.mxu0 %v1311_v19  ;;  %1364 = vmatpush.msra.mxu2 %v1283_v31  ;;  %v1319_v31 = vld [vmem:[%s2499_s5 + $0x1b8] sm:$0xff] }
 0x1c6   :  { %1373 = vmatpush.msrb.mxu0 %v1310_v21  ;;  %1365 = vmatpush.msra.mxu2 %v1282_v32  ;;  %v1321_v21 = vld [vmem:[%s2499_s5 + $0x1c8] sm:$0xff] }
 0x1c8   :  { %v979_v42 = vpop.f32.mrf.mxu1  ;;  %1374 = vmatpush.msrb.mxu0 %v1309_v23  ;;  %1366 = vmatpush.msra.mxu2 %v1281_v1 }
 0x1c9   :  { %v980_v43 = vadd.f32 %v979_v42, %v2220_v17  ;;  %v1055_v9 = vpop.f32.mrf.mxu0 }
 0x1ca   :  { %1375 = vmatpush.msrb.mxu0 %v1308_v29  ;;  %1367 = vmatpush.msra.mxu2 %v1280_v53 }
 0x1cb   :  { %1192 = vmatmul.f32.gmra.mxu3 %v1471_v56  ;;  %v1307_v56 = vld [vmem:[%s2499_s5 + $0x158] sm:$0xff] }
 0x1cc   :  { %1376 = vmatpush.msrb.mxu0 %v1307_v56  ;;  %1392 = vmatpush.msrb.mxu2 %v1327_v50  ;;  %v977_v56 = vadd.f32 %v2239_v7, %v2220_v17 }
 0x1ce   :  { %v2241_v40 = vpop.f32.mrf.mxu3  ;;  %1377 = vmatpush.msrb.mxu0 %v1306_v34  ;;  %1393 = vmatpush.msrb.mxu2 %v1326_v55  ;;  %v1318_v34 = vld [vmem:[%s2499_s5 + $0x1b0] sm:$0xff] }
 0x1d0   :  { %1378 = vmatpush.msrb.mxu0 %v1305_v38  ;;  %1394 = vmatpush.msrb.mxu2 %v1325_v60  ;;  %v1018_v38 = vadd.f32 %v2241_v40, %v977_v56 }
 0x1d8   :  { %v2249_v47 = vpop.f32.mrf.mxu1 }
 0x1d9   :  { %v1058_v30 = vpop.f32.mrf.mxu0 }
 0x1da   :  { %v1059_v7 = vadd.f32 %v1058_v30, %v1018_v38 }
 0x1dc   :  { %v1202_v55 = vmax.f32 %v1059_v7, 0.0 }
 0x1de   :  { %v1020_v44 = vpop.f32.mrf.mxu3 }
 0x1df   :  { %v2244_v45 = vadd.f32 %v1020_v44, %v980_v43  ;;  %v1304_v43 = vld [vmem:[%s2499_s5 + $0x140] sm:$0xff]  ;;  %v1093_v44 = vpop.f32.mrf.mxu2 }
 0x1e0   :  { %1379 = vmatpush.msrb.mxu0 %v1304_v43  ;;  %v1094_v57 = vadd.f32 %v1093_v44, %v2366_v35  ;;  %v1056_v43 = vadd.f32 %v1055_v9, %v2237_v33 }
 0x1e2   :  { %1380 = vmatpush.msrb.mxu0 %v1303_v49 }
 0x1e8   :  { %v985_v54 = vpop.f32.mrf.mxu1 }
 0x1e9   :  { %v986_v3 = vadd.f32 %v985_v54, %v2220_v17  ;;  %v1302_v54 = vld [vmem:[%s2499_s5 + $0x130] sm:$0xff]  ;;  %v1061_v51 = vpop.f32.mrf.mxu0 }
 0x1ea   :  { %1381 = vmatpush.msrb.mxu0 %v1302_v54  ;;  %v1200_v54 = vmax.f32 %v1056_v43, 0.0 }
 0x1ec   :  { %1382 = vmatpush.msrb.mxu0 %v1301_v41  ;;  %v1313_v41 = vld [vmem:[%s2499_s5 + $0x188] sm:$0xff] }
 0x1ee   :  { %v2275_v25 = vpop.f32.mrf.mxu3  ;;  %1383 = vmatpush.msrb.mxu0 %v1300_v37 }
 0x1f0   :  { %1384 = vmatpush.msrb.mxu0 %v1299_v36 }
 0x1f2   :  { %1385 = vmatpush.msrb.mxu0 %v1298_v15 }
 0x1f4   :  { %1386 = vmatpush.msrb.mxu0 %v1297_v20 }
 0x1f6   :  { %1387 = vmatpush.msrb.mxu0 %v1296_v24 }
 0x1f8   :  { %v2283_v61 = vpop.f32.mrf.mxu1 }
 0x1fe   :  { %v1026_v4 = vpop.f32.mrf.mxu3 }
 0x1ff   :  { %v2301_v6 = vadd.f32 %v1026_v4, %v986_v3  ;;  %v1324_v3 = vld [vmem:[%s2499_s5 + $0x1e0] sm:$0xff]  ;;  %v1096_v4 = vpop.f32.mrf.mxu2 }
 0x200   :  { %v1131_v12 = vpop.f32.mrf.mxu1  ;;  %1395 = vmatpush.msrb.mxu2 %v1324_v3  ;;  %v1097_v28 = vadd.f32 %v1096_v4, %v2366_v35  ;;  %v1064_v3 = vpop.f32.mrf.mxu0  ;;  %v983_v4 = vadd.f32 %v2249_v47, %v2220_v17 }
 0x201   :  { %v1132_v52 = vadd.f32 %v1131_v12, %v1091_v39  ;;  %v1198_v12 = vmax.f32 %v1053_v63, 0.0 }
 0x202   :  { %1396 = vmatpush.msrb.mxu2 %v1323_v10  ;;  %v1024_v9 = vadd.f32 %v2275_v25, %v983_v4  ;;  %v1062_v10 = vadd.f32 %v1061_v51, %v2244_v45  ;;  %v989_v45 = vadd.f32 %v2283_v61, %v2220_v17 }
 0x204   :  { %1397 = vmatpush.msrb.mxu2 %v1322_v16  ;;  %v1204_v20 = vmax.f32 %v1062_v10, 0.0 }
 0x206   :  { %1398 = vmatpush.msrb.mxu2 %v1321_v21 }
 0x207   :  { %v1099_v29 = vpop.f32.mrf.mxu2 }
 0x208   :  { %v1100_v1 = vadd.f32 %v1099_v29, %v2366_v35 }
 0x209   :  { %v1134_v26 = vpop.f32.mrf.mxu1 }
 0x20a   :  { %v1135_v0 = vadd.f32 %v1134_v26, %v1094_v57  ;;  %v1320_v26 = vld [vmem:[%s2499_s5 + $0x1c0] sm:$0xff]  ;;  %v1314_v57 = vld [vmem:[%s2499_s5 + $0x190] sm:$0xff] }
 0x20b   :  { %1399 = vmatpush.msrb.mxu2 %v1320_v26 }
 0x20d   :  { %1400 = vmatpush.msrb.mxu2 %v1319_v31 }
 0x20e   :  { %v2345_v27 = vpop.f32.mrf.mxu3 }
 0x20f   :  { %1401 = vmatpush.msrb.mxu2 %v1318_v34  ;;  %v1102_v49 = vpop.f32.mrf.mxu2  ;;  %v1030_v29 = vadd.f32 %v2345_v27, %v989_v45  ;;  %v173_v27 = vld [vmem:[%s2493_s0] sm:$0xff] }
 0x210   :  { %205 = vrot.lane.b32.xlu2 %v173_v27, %s1473_s16 }
 0x211   :  { %v1137_v48 = vpop.f32.mrf.mxu1 }
 0x212   :  { %v1138_v32 = vadd.f32 %v1137_v48, %v1097_v28  ;;  %v1316_v48 = vld [vmem:[%s2499_s5 + $0x1a0] sm:$0xff] }
 0x216   :  { %v1172_v42 = vpop.f32.mrf.mxu3 }
 0x217   :  { %v1173_v59 = vadd.f32 %v1172_v42, %v1132_v52  ;;  %v1317_v42 = vld [vmem:[%s2499_s5 + $0x1a8] sm:$0xff]  ;;  %v1315_v52 = vld [vmem:[%s2499_s5 + $0x198] sm:$0xff]  ;;  %v1105_v37 = vpop.f32.mrf.mxu2 }
 0x218   :  { %1402 = vmatpush.msrb.mxu2 %v1317_v42 }
 0x219   :  { %v1197_v5 = vmax.f32 %v1173_v59, 0.0  ;;  %v1140_v14 = vpop.f32.mrf.mxu1 }
 0x21a   :  { %v1141_v44 = vadd.f32 %v1140_v14, %v1100_v1  ;;  %1403 = vmatpush.msrb.mxu2 %v1316_v48 }
 0x21b   :  { %v1230_v18 = vmax.f32 %v1196_v11, %v1197_v5  ;;  %v1065_v11 = vadd.f32 %v1064_v3, %v1024_v9 }
 0x21c   :  { %1404 = vmatpush.msrb.mxu2 %v1315_v52 }
 0x21d   :  { %v1206_v21 = vmax.f32 %v1065_v11, 0.0 }
 0x21e   :  { %v1175_v2 = vpop.f32.mrf.mxu3  ;;  %1405 = vmatpush.msrb.mxu2 %v1314_v57  ;;  %v1469_v57 = vld [vmem:[%s2500_s7] ss:$0 sm:$0xff] }
 0x21f   :  { %v1176_v8 = vadd.f32 %v1175_v2, %v1135_v0  ;;  %v1103_v2 = vadd.f32 %v1102_v49, %v2366_v35  ;;  %v1108_v14 = vpop.f32.mrf.mxu2  ;;  %v1468_v49 = vld [vmem:[%s2498_s6] ss:$0 sm:$0xff] }
 0x220   :  { %1406 = vmatpush.msrb.mxu2 %v1313_v41  ;;  %v1109_v25 = vadd.f32 %v1108_v14, %v2366_v35 }
 0x221   :  { %v1199_v13 = vmax.f32 %v1176_v8, 0.0  ;;  %v1143_v53 = vpop.f32.mrf.mxu1  ;;  %v1106_v8 = vadd.f32 %v1105_v37, %v2366_v35 }
 0x222   :  { %1407 = vmatpush.msrb.mxu2 %v1312_v62  ;;  %v1144_v5 = vadd.f32 %v1143_v53, %v1103_v2 }
 0x223   :  { %v1233_v19 = vmax.f32 %v1198_v12, %v1199_v13 }
 0x225   :  { %v1234_v22 = vmax.f32 %v1230_v18, %v1233_v19  ;;  %v1067_v18 = vpop.f32.mrf.mxu0 }
 0x226   :  { %v1178_v23 = vpop.f32.mrf.mxu3  ;;  %v1068_v1 = vadd.f32 %v1067_v18, %v2301_v6  ;;  %v14_v6 = vstv %s2501_s8 }
 0x227   :  { %1348 = vmatmul.f32.vlgmr.msra.gmra.mxu0 %v1234_v22  ;;  %v1179_v39 = vadd.f32 %v1178_v23, %v1138_v32  ;;  %v1111_v28 = vpop.f32.mrf.mxu2  ;;  %15 = vst [vmem:[#allocation7] sm:$0x1] %v14_v6 }
 0x228   :  { %v1112_v32 = vadd.f32 %v1111_v28, %v2366_v35  ;;  %v1208_v7 = vmax.f32 %v1068_v1, 0.0 }
 0x229   :  { %v1201_v50 = vmax.f32 %v1179_v39, 0.0  ;;  %v1146_v63 = vpop.f32.mrf.mxu1 }
 0x22a   :  { %v1147_v12 = vadd.f32 %v1146_v63, %v1106_v8 }
 0x22b   :  { %v1238_v58 = vmax.f32 %v1200_v54, %v1201_v50 }
 0x22d   :  { %v1070_v31 = vpop.f32.mrf.mxu0 }
 0x22e   :  { %v1181_v46 = vpop.f32.mrf.mxu3  ;;  %v1071_v38 = vadd.f32 %v1070_v31, %v1030_v29  ;;  %v1470_v62 = vld [vmem:[#allocation7] ss:$0 sm:$0xff] }
 0x22f   :  { %v1182_v40 = vadd.f32 %v1181_v46, %v1141_v44 }
 0x230   :  { %v1210_v44 = vmax.f32 %v1071_v38, 0.0 }
 0x231   :  { %v1203_v33 = vmax.f32 %v1182_v40, 0.0  ;;  %v1149_v19 = vpop.f32.mrf.mxu1 }
 0x232   :  { %v1150_v30 = vadd.f32 %v1149_v19, %v1109_v25 }
 0x233   :  { %v1241_v59 = vmax.f32 %v1202_v55, %v1203_v33 }
 0x235   :  { %v1242_v60 = vmax.f32 %v1238_v58, %v1241_v59 }
 0x236   :  { %v1184_v0 = vpop.f32.mrf.mxu3 }
 0x237   :  { %1368 = vmatmul.f32.vlgmr.msra.gmra.mxu2 %v1242_v60  ;;  %v1185_v36 = vadd.f32 %v1184_v0, %v1144_v5 }
 0x239   :  { %v1205_v15 = vmax.f32 %v1185_v36, 0.0  ;;  %v1152_v56 = vpop.f32.mrf.mxu1 }
 0x23a   :  { %v1153_v39 = vadd.f32 %v1152_v56, %v1112_v32 }
 0x23b   :  { %v1246_v47 = vmax.f32 %v1204_v20, %v1205_v15 }
 0x23e   :  { %v1187_v13 = vpop.f32.mrf.mxu3 }
 0x23f   :  { %v1188_v16 = vadd.f32 %v1187_v13, %v1147_v12 }
 0x241   :  { %v1207_v22 = vmax.f32 %v1188_v16, 0.0 }
 0x243   :  { %v1249_v23 = vmax.f32 %v1206_v21, %v1207_v22 }
 0x245   :  { %v1250_v24 = vmax.f32 %v1246_v47, %v1249_v23 }
 0x246   :  { %v1190_v26 = vpop.f32.mrf.mxu3 }
 0x247   :  { %1388 = vmatmul.f32.vlgmr.msrb.gmra.mxu0 %v1250_v24  ;;  %v1191_v34 = vadd.f32 %v1190_v26, %v1150_v30 }
 0x249   :  { %v1209_v53 = vmax.f32 %v1191_v34, 0.0 }
 0x24b   :  { %v1254_v61 = vmax.f32 %v1208_v7, %v1209_v53 }
 0x24e   :  { %v1193_v42 = vpop.f32.mrf.mxu3 }
 0x24f   :  { %v1194_v43 = vadd.f32 %v1193_v42, %v1153_v39 }
 0x251   :  { %v1211_v17 = vmax.f32 %v1194_v43, 0.0 }
 0x253   :  { %v1257_v46 = vmax.f32 %v1210_v44, %v1211_v17 }
 0x255   :  { %v1258_v48 = vmax.f32 %v1254_v61, %v1257_v46 }
 0x257   :  { %1408 = vmatmul.f32.vlgmr.msrb.gmra.mxu2 %v1258_v48 }
 0x26a   :  { %v206_v60 = vpop.permute.xlu2 %205 }
 0x26b   :  { %254 = vst.msk [vmem:[#allocation2] sm:$0xff] %vm253_vm3, %v206_v60 }
 0x2a4   :  { %v1349_v35 = vpop.f32.mrf.mxu0 }
 0x2a5   :  { %v1350_v40 = vadd.f32 %v1468_v49, %v1349_v35 }
 0x2ba   :  { %v1369_v50 = vpop.f32.mrf.mxu2 }
 0x2bb   :  { %v1370_v52 = vadd.f32 %v1369_v50, %v1350_v40 }
 0x2c4   :  { %v1389_v51 = vpop.f32.mrf.mxu0 }
 0x2c5   :  { %v1390_v54 = vadd.f32 %v1389_v51, %v1370_v52 }
 0x2da   :  { %v1409_v55 = vpop.f32.mrf.mxu2 }
 0x2db   :  { %v1410_v33 = vadd.f32 %v1409_v55, %v1390_v54 }
 0x2dd   :  { %v1412_v58 = vmax.f32 %v1410_v33, 0.0 }
 0x2df   :  { %v1417_v59 = vmul.f32 %v1469_v57, %v1412_v58 }
 0x2e1   :  { %v1419_v41 = vsel %vm1418_vm4, %v1417_v59, 0.0 }
 0x2e2   :  { %1420 = vadd.xlane.f32.xlu1 %v1419_v41 }
 0x355   :  { %v1421_v63 = vpop.xlane.xlu1 %1420 }
 0x356   :  { %v1426_v0 = vadd.f32 %v1470_v62, %v1421_v63 }
 0x358   :  { %1428 = vst.msk [vmem:[%s2502_s9] sm:$0xff] %vm1427_vm5, %v1426_v0 }

</bundles_post_ra>
